<compile_context>
chip_gen: v6e
topology: v6e:2x2x1
jax: 0.10.0
libtpu: 0.0.40
codegen_flags: <defaults>
</compile_context>

<pallas_src>
import functools

import jax
import jax.numpy as jnp
from jax.experimental import pallas as pl
from jax.experimental.pallas import tpu as pltpu


def _round_up(x, m):
    return -(-x // m) * m


def _pick_row_block(H, W, C):
    """Largest divisor TH of H keeping the per-block live set modest."""
    # Aim for TH*W*4C*4B <= ~2 MiB for the dominant (rows, 4C) f32 pieces.
    target = max(1, (2 * 1024 * 1024) // max(1, W * 4 * C * 4))
    best = H                                  # safe fallback: whole image
    for th in range(1, H + 1):
        if H % th:
            continue
        if th != H and (th * W) % 8 != 0:     # keep output sublane dim 8-aligned
            continue
        if th <= target:
            best = th                         # ascending -> ends at largest <= target
    return best


def _vmem_bytes_estimate(TH, W, C, Kp):
    """Rough VMEM footprint (double-buffered blocks + scratch + live values)."""
    R = TH + 2
    lane = lambda c: _round_up(c, 128)
    sub = lambda s: _round_up(s, 8)
    xp_blk = sub(R * W) * lane(Kp) * 4
    out_blk = sub(TH * W) * lane(4 * C) * 4
    pad2 = R * sub(W + 2) * lane(C) * 4
    vals = (sub(R * W) * lane(C) + 2 * sub(TH * W) * lane(3 * C)
            + sub(TH * W) * lane(4 * C)) * 4
    return 2 * (xp_blk + out_blk) + pad2 + vals


def _up_conv_kernel(xp_ref, w1_ref, b1_ref, w2_ref, b2_ref, wup_ref, bup_ref,
                    o_ref, pad2_ref, *, TH, W, C, nblk):
    # xp_ref : (1, 1, (TH+2)*W, Kp)  conv1 im2col patches for this row block
    # w1_ref : (Kp, C)               conv1 weight (rows: dy,dx,cin; zero-padded)
    # w2_ref : (3, 3*C, C)           conv2 weight, per-dy slabs (rows: dx,cin)
    # wup_ref: (C, 4*C)              up-conv weight, cols ordered (ki, kj, co)
    # o_ref  : (1, TH*W, 4*C)        output rows for this block (dense 128 lanes)
    # pad2_ref: (TH+2, W+2, C) VMEM  zero-bordered conv1 output staging
    r = pl.program_id(1)
    R = TH + 2

    # ---------------- conv1: 3x3, pad 1, bias, ReLU (one im2col matmul) -----
    y1 = jnp.dot(xp_ref[0, 0], w1_ref[...], preferred_element_type=jnp.float32)
    y1 = jnp.maximum(y1 + b1_ref[0, :], 0.0)                     # (R*W, C)

    # Stage y1 (incl. halo rows) into pad2; only the border strips are
    # re-zeroed each step -- the interior is fully overwritten.
    pad2_ref[:, 1:W + 1, :] = y1.reshape(R, W, C)
    pad2_ref[:, 0:1, :] = jnp.zeros((R, 1, C), jnp.float32)
    pad2_ref[:, W + 1:W + 2, :] = jnp.zeros((R, 1, C), jnp.float32)

    # conv2's zero padding along H: halo rows outside the image must read as
    # zeros (not conv1 applied to zero padding).  Megacore-safe (per-step).
    @pl.when(r == 0)
    def _():
        pad2_ref[0:1, :, :] = jnp.zeros((1, W + 2, C), jnp.float32)

    @pl.when(r == nblk - 1)
    def _():
        pad2_ref[R - 1:R, :, :] = jnp.zeros((1, W + 2, C), jnp.float32)

    # ---------------- conv2: 3x3, pad 1, bias, ReLU --------------------------
    # Three K=3C dots: the per-dy 3-tap lane concat (96 lanes at C=32) stays
    # inside one vreg, unlike the old 9-tap (288-lane) concat.
    acc2 = None
    for dy in range(3):
        band = pad2_ref[dy:dy + TH, :, :]                        # (TH, W+2, C)
        p2 = jnp.concatenate([band[:, dx:dx + W, :] for dx in range(3)],
                             axis=-1).reshape(TH * W, 3 * C)
        d = jnp.dot(p2, w2_ref[dy], preferred_element_type=jnp.float32)
        acc2 = d if acc2 is None else acc2 + d
    y2 = jnp.maximum(acc2 + b2_ref[0, :], 0.0)                   # (TH*W, C)

    # ---------------- ConvTranspose2d(k=2, s=2) ------------------------------
    # stride == kernel -> no output overlap; one fused (TH*W, C) @ (C, 4C) dot.
    # Column order (ki, kj, co) makes the result exactly the output memory
    # order -> single dense 128-lane store, no masked vst, no relayout.
    yu = jnp.dot(y2, wup_ref[...], preferred_element_type=jnp.float32) + bup_ref[0, :]
    o_ref[0] = yu


@functools.partial(jax.jit, static_argnames=("row_block",))
def up_conv_forward(x_nchw, w1, b1, w2, b2, w_up, b_up, *, row_block=None):
    """Up_conv forward. x_nchw (N,Cin,H,W); weights in PyTorch layouts."""
    N, Cin, H, W = x_nchw.shape
    C = w1.shape[0]

    TH = _pick_row_block(H, W, C) if row_block is None else int(row_block)
    assert H % TH == 0, "row_block must divide H"
    nblk = H // TH
    assert nblk == 1 or (TH * W) % 8 == 0, "row_block*W must be a multiple of 8"
    R = TH + 2
    K9 = 9 * Cin
    Kp = _round_up(K9, 8)                     # pad the tiny conv1 K dim

    # ---------------- layout glue (small, XLA side) --------------------------
    x_nhwc = jnp.transpose(x_nchw, (0, 2, 3, 1)).astype(jnp.float32)
    # conv1 im2col patches for y1 rows -1..H (the conv2 halo), zero-padded.
    xp = jnp.pad(x_nhwc, ((0, 0), (2, 2), (1, 1), (0, 0)))       # (N, H+4, W+2, Cin)
    taps = [xp[:, dy:dy + H + 2, dx:dx + W, :]
            for dy in range(3) for dx in range(3)]
    patches = jnp.concatenate(taps, axis=-1)                     # (N, H+2, W, 9Cin)
    if Kp != K9:
        patches = jnp.pad(patches, ((0, 0), (0, 0), (0, 0), (0, Kp - K9)))
    # Per-block halo'd slabs (blocks overlap by 2 rows -> duplicate them so the
    # BlockSpec stays a plain non-overlapping tile).
    slabs = jnp.stack([patches[:, r * TH:r * TH + R] for r in range(nblk)],
                      axis=1).reshape(N, nblk, R * W, Kp)

    w1_mat = jnp.transpose(w1, (2, 3, 1, 0)).reshape(K9, C)      # rows (dy,dx,cin)
    if Kp != K9:
        w1_mat = jnp.pad(w1_mat, ((0, Kp - K9), (0, 0)))
    w2_mat = jnp.transpose(w2, (2, 3, 1, 0)).reshape(3, 3 * C, C)
    # ConvTranspose2d weight (in=C, out=C, 2, 2) -> (C, 4C), cols (ki, kj, co).
    wup_mat = jnp.transpose(w_up, (0, 2, 3, 1)).reshape(C, 4 * C)
    b1m = b1.reshape(1, C)
    b2m = b2.reshape(1, C)
    bupm = jnp.tile(b_up, 4).reshape(1, 4 * C)

    kernel = functools.partial(_up_conv_kernel, TH=TH, W=W, C=C, nblk=nblk)
    vmem_limit = int(min(48 * 2 ** 20,
                         max(32 * 2 ** 20, 2 * _vmem_bytes_estimate(TH, W, C, Kp))))

    out = pl.pallas_call(
        kernel,
        out_shape=jax.ShapeDtypeStruct((N, H * W, 4 * C), jnp.float32),
        grid_spec=pltpu.PrefetchScalarGridSpec(
            num_scalar_prefetch=0,
            grid=(N, nblk),
            in_specs=[
                pl.BlockSpec((1, 1, R * W, Kp), lambda n, r: (n, r, 0, 0)),
                pl.BlockSpec((Kp, C), lambda n, r: (0, 0)),
                pl.BlockSpec((1, C), lambda n, r: (0, 0)),
                pl.BlockSpec((3, 3 * C, C), lambda n, r: (0, 0, 0)),
                pl.BlockSpec((1, C), lambda n, r: (0, 0)),
                pl.BlockSpec((C, 4 * C), lambda n, r: (0, 0)),
                pl.BlockSpec((1, 4 * C), lambda n, r: (0, 0)),
            ],
            out_specs=pl.BlockSpec((1, TH * W, 4 * C), lambda n, r: (n, r, 0)),
            scratch_shapes=[pltpu.VMEM((R, W + 2, C), jnp.float32)],
        ),
        compiler_params=pltpu.CompilerParams(
            dimension_semantics=("parallel", "parallel"),
            vmem_limit_bytes=vmem_limit),
    )(slabs, w1_mat, b1m, w2_mat, b2m, wup_mat, bupm)

    # (N, H*W, 4C) with cols (ki,kj,co) -> NCHW (N, C, 2H, 2W).  The (ki,kj)
    # de-interleave rides on the NHWC->NCHW transpose we pay anyway.
    out6 = out.reshape(N, H, W, 2, 2, C)
    return jnp.transpose(out6, (0, 5, 1, 3, 2, 4)).reshape(N, C, 2 * H, 2 * W)


# ----------------------------------------------------------------------------
# Pure-JAX reference for verification.
# ----------------------------------------------------------------------------
def _ref_forward(x_nchw, w1, b1, w2, b2, w_up, b_up):
    def conv(x, w, b):
        y = jax.lax.conv_general_dilated(
            x, w, window_strides=(1, 1), padding=((1, 1), (1, 1)),
            dimension_numbers=("NCHW", "OIHW", "NCHW"))
        return jax.nn.relu(y + b[None, :, None, None])

    y = conv(x_nchw, w1, b1)
    y = conv(y, w2, b2)
    N, C, H, W = y.shape
    Co = w_up.shape[1]
    t = jnp.einsum("ncij,cdkl->ndikjl", y, w_up)
    return t.reshape(N, Co, 2 * H, 2 * W) + b_up[None, :, None, None]


if __name__ == "__main__":
    key = jax.random.PRNGKey(0)
    k_x, k_w1, k_b1, k_w2, k_b2, k_wu, k_bu = jax.random.split(key, 7)

    # Module defaults: in_channels=1, out_channels=32, kernel=3, stride=1,
    # padding=1, n_filters_per_depth=2, ConvTranspose2d(kernel=2, stride=2).
    N, Cin, Hs, Ws = 2, 1, 16, 16
    Cout = 32

    x = jax.random.normal(k_x, (N, Cin, Hs, Ws), jnp.float32)
    w1 = jax.random.normal(k_w1, (Cout, Cin, 3, 3), jnp.float32) / jnp.sqrt(Cin * 9.0)
    b1 = jax.random.normal(k_b1, (Cout,), jnp.float32) * 0.1
    w2 = jax.random.normal(k_w2, (Cout, Cout, 3, 3), jnp.float32) / jnp.sqrt(Cout * 9.0)
    b2 = jax.random.normal(k_b2, (Cout,), jnp.float32) * 0.1
    w_up = jax.random.normal(k_wu, (Cout, Cout, 2, 2), jnp.float32) / jnp.sqrt(Cout * 4.0)
    b_up = jax.random.normal(k_bu, (Cout,), jnp.float32) * 0.1

    ref = _ref_forward(x, w1, b1, w2, b2, w_up, b_up)

    # Exercise both the row-blocked (halo) path and the single-block path.
    out_tiled = jax.block_until_ready(
        up_conv_forward(x, w1, b1, w2, b2, w_up, b_up, row_block=8))
    out_whole = jax.block_until_ready(
        up_conv_forward(x, w1, b1, w2, b2, w_up, b_up))

    assert out_tiled.shape == (N, Cout, 2 * Hs, 2 * Ws), out_tiled.shape
    for o in (out_tiled, out_whole):
        err = float(jnp.max(jnp.abs(o - ref)))
        assert jnp.allclose(o, ref, atol=3e-4, rtol=3e-4), err

    print("KERNEL_OK")
</pallas_src>

<mosaic_0001>
module attributes {stable_mosaic.version = 11 : i64} {
  func.func @_up_conv_kernel(%arg0: i32, %arg1: i32, %arg2: memref<1x1x160x16xf32, #tpu.memory_space<vmem>>, %arg3: memref<16x32xf32, #tpu.memory_space<vmem>>, %arg4: memref<1x32xf32, #tpu.memory_space<vmem>>, %arg5: memref<3x96x32xf32, #tpu.memory_space<vmem>>, %arg6: memref<1x32xf32, #tpu.memory_space<vmem>>, %arg7: memref<32x128xf32, #tpu.memory_space<vmem>>, %arg8: memref<1x128xf32, #tpu.memory_space<vmem>>, %arg9: memref<1x128x128xf32, #tpu.memory_space<vmem>>, %arg10: memref<10x18x32xf32, #tpu.memory_space<vmem>>) attributes {dimension_semantics = [#tpu.dimension_semantics<parallel>, #tpu.dimension_semantics<parallel>], iteration_bounds = array<i64: 2, 2>, scalar_prefetch = 0 : i64, scratch_operands = 1 : i64, tpu.core_type = #tpu.core_type<tc>, window_params = [{transform_indices = @transform_0, window_bounds = array<i64: 1, 1, 160, 16>}, {pipeline_mode = #tpu.pipeline_mode<synchronous>, transform_indices = @transform_1, window_bounds = array<i64: 16, 32>}, {pipeline_mode = #tpu.pipeline_mode<synchronous>, transform_indices = @transform_2, window_bounds = array<i64: 1, 32>}, {pipeline_mode = #tpu.pipeline_mode<synchronous>, transform_indices = @transform_3, window_bounds = array<i64: 3, 96, 32>}, {pipeline_mode = #tpu.pipeline_mode<synchronous>, transform_indices = @transform_4, window_bounds = array<i64: 1, 32>}, {pipeline_mode = #tpu.pipeline_mode<synchronous>, transform_indices = @transform_5, window_bounds = array<i64: 32, 128>}, {pipeline_mode = #tpu.pipeline_mode<synchronous>, transform_indices = @transform_6, window_bounds = array<i64: 1, 128>}, {transform_indices = @transform_7, window_bounds = array<i64: 1, 128, 128>}]} {
    %c0 = arith.constant 0 : index
    %c0_0 = arith.constant 0 : index
    %c0_1 = arith.constant 0 : index
    %c0_2 = arith.constant 0 : index
    %0 = vector.load %arg2[%c0, %c0_0, %c0_1, %c0_2] : memref<1x1x160x16xf32, #tpu.memory_space<vmem>>, vector<1x1x160x16xf32>
    %1 = vector.shape_cast %0 : vector<1x1x160x16xf32> to vector<160x16xf32>
    %c0_3 = arith.constant 0 : index
    %c0_4 = arith.constant 0 : index
    %2 = vector.load %arg3[%c0_3, %c0_4] : memref<16x32xf32, #tpu.memory_space<vmem>>, vector<16x32xf32>
    %cst = arith.constant dense<0.000000e+00> : vector<160x32xf32>
    %3 = tpu.matmul %1, %2, %cst {dimension_numbers = #tpu.dot_dimension_numbers<[1], [0], [0], [1], [0, 0, 1, 1], [], []>} : vector<160x16xf32>, vector<16x32xf32>, vector<160x32xf32> -> vector<160x32xf32>
    %c0_5 = arith.constant 0 : index
    %c0_6 = arith.constant 0 : index
    %4 = vector.load %arg4[%c0_5, %c0_6] : memref<1x32xf32, #tpu.memory_space<vmem>>, vector<1x32xf32>
    %5 = vector.shape_cast %4 : vector<1x32xf32> to vector<32xf32>
    %6 = vector.shape_cast %5 : vector<32xf32> to vector<1x32xf32>
    %7 = vector.broadcast %6 : vector<1x32xf32> to vector<160x32xf32>
    %8 = arith.addf %3, %7 : vector<160x32xf32>
    %cst_7 = arith.constant 0.000000e+00 : f32
    %9 = vector.broadcast %cst_7 : f32 to vector<160x32xf32>
    %10 = arith.maximumf %8, %9 : vector<160x32xf32>
    %11 = vector.shape_cast %10 : vector<160x32xf32> to vector<10x16x32xf32>
    %c0_8 = arith.constant 0 : index
    %c1 = arith.constant 1 : index
    %c0_9 = arith.constant 0 : index
    %12 = vector.load %arg10[%c0_8, %c1, %c0_9] : memref<10x18x32xf32, #tpu.memory_space<vmem>>, vector<10x16x32xf32>
    tpu.vector_store %arg10[%c0_8, %c1, %c0_9], %11 {strides = array<i32>} : memref<10x18x32xf32, #tpu.memory_space<vmem>>, vector<10x16x32xf32>,
    %cst_10 = arith.constant 0.000000e+00 : f32
    %13 = vector.broadcast %cst_10 : f32 to vector<10x1x32xf32>
    %c0_11 = arith.constant 0 : index
    %c0_12 = arith.constant 0 : index
    %c0_13 = arith.constant 0 : index
    %14 = vector.load %arg10[%c0_11, %c0_12, %c0_13] : memref<10x18x32xf32, #tpu.memory_space<vmem>>, vector<10x1x32xf32>
    tpu.vector_store %arg10[%c0_11, %c0_12, %c0_13], %13 {strides = array<i32>} : memref<10x18x32xf32, #tpu.memory_space<vmem>>, vector<10x1x32xf32>,
    %cst_14 = arith.constant 0.000000e+00 : f32
    %15 = vector.broadcast %cst_14 : f32 to vector<10x1x32xf32>
    %c0_15 = arith.constant 0 : index
    %c17 = arith.constant 17 : index
    %c0_16 = arith.constant 0 : index
    %16 = vector.load %arg10[%c0_15, %c17, %c0_16] : memref<10x18x32xf32, #tpu.memory_space<vmem>>, vector<10x1x32xf32>
    tpu.vector_store %arg10[%c0_15, %c17, %c0_16], %15 {strides = array<i32>} : memref<10x18x32xf32, #tpu.memory_space<vmem>>, vector<10x1x32xf32>,
    %c0_i32 = arith.constant 0 : i32
    %17 = arith.cmpi eq, %arg1, %c0_i32 : i32
    %18 = arith.extui %17 : i1 to i32
    %c0_i32_17 = arith.constant 0 : i32
    %19 = arith.cmpi ne, %18, %c0_i32_17 : i32
    scf.if %19 {
      %cst_50 = arith.constant 0.000000e+00 : f32
      %69 = vector.broadcast %cst_50 : f32 to vector<1x18x32xf32>
      %c0_51 = arith.constant 0 : index
      %c0_52 = arith.constant 0 : index
      %c0_53 = arith.constant 0 : index
      %70 = vector.load %arg10[%c0_51, %c0_52, %c0_53] : memref<10x18x32xf32, #tpu.memory_space<vmem>>, vector<1x18x32xf32>
      tpu.vector_store %arg10[%c0_51, %c0_52, %c0_53], %69 {strides = array<i32>} : memref<10x18x32xf32, #tpu.memory_space<vmem>>, vector<1x18x32xf32>,
    } else {
    }
    %c1_i32 = arith.constant 1 : i32
    %20 = arith.cmpi eq, %arg1, %c1_i32 : i32
    %21 = arith.extui %20 : i1 to i32
    %c0_i32_18 = arith.constant 0 : i32
    %22 = arith.cmpi ne, %21, %c0_i32_18 : i32
    scf.if %22 {
      %cst_50 = arith.constant 0.000000e+00 : f32
      %69 = vector.broadcast %cst_50 : f32 to vector<1x18x32xf32>
      %c9 = arith.constant 9 : index
      %c0_51 = arith.constant 0 : index
      %c0_52 = arith.constant 0 : index
      %70 = vector.load %arg10[%c9, %c0_51, %c0_52] : memref<10x18x32xf32, #tpu.memory_space<vmem>>, vector<1x18x32xf32>
      tpu.vector_store %arg10[%c9, %c0_51, %c0_52], %69 {strides = array<i32>} : memref<10x18x32xf32, #tpu.memory_space<vmem>>, vector<1x18x32xf32>,
    } else {
    }
    %c0_19 = arith.constant 0 : index
    %c0_20 = arith.constant 0 : index
    %c0_21 = arith.constant 0 : index
    %23 = vector.load %arg10[%c0_19, %c0_20, %c0_21] : memref<10x18x32xf32, #tpu.memory_space<vmem>>, vector<8x18x32xf32>
    %24 = vector.extract_strided_slice %23 {offsets = [0, 0, 0], sizes = [8, 16, 32], strides = [1, 1, 1]} : vector<8x18x32xf32> to vector<8x16x32xf32>
    %25 = vector.extract_strided_slice %23 {offsets = [0, 1, 0], sizes = [8, 16, 32], strides = [1, 1, 1]} : vector<8x18x32xf32> to vector<8x16x32xf32>
    %26 = vector.extract_strided_slice %23 {offsets = [0, 2, 0], sizes = [8, 16, 32], strides = [1, 1, 1]} : vector<8x18x32xf32> to vector<8x16x32xf32>
    %27 = tpu.concatenate %24, %25, %26 in 2 : vector<8x16x32xf32>, vector<8x16x32xf32>, vector<8x16x32xf32> -> vector<8x16x96xf32>
    %28 = vector.shape_cast %27 : vector<8x16x96xf32> to vector<128x96xf32>
    %c0_22 = arith.constant 0 : index
    %c0_23 = arith.constant 0 : index
    %c0_24 = arith.constant 0 : index
    %29 = vector.load %arg5[%c0_22, %c0_23, %c0_24] : memref<3x96x32xf32, #tpu.memory_space<vmem>>, vector<1x96x32xf32>
    %30 = vector.shape_cast %29 : vector<1x96x32xf32> to vector<96x32xf32>
    %cst_25 = arith.constant dense<0.000000e+00> : vector<128x32xf32>
    %31 = tpu.matmul %28, %30, %cst_25 {dimension_numbers = #tpu.dot_dimension_numbers<[1], [0], [0], [1], [0, 0, 1, 1], [], []>} : vector<128x96xf32>, vector<96x32xf32>, vector<128x32xf32> -> vector<128x32xf32>
    %c1_26 = arith.constant 1 : index
    %c0_27 = arith.constant 0 : index
    %c0_28 = arith.constant 0 : index
    %32 = vector.load %arg10[%c1_26, %c0_27, %c0_28] : memref<10x18x32xf32, #tpu.memory_space<vmem>>, vector<8x18x32xf32>
    %33 = vector.extract_strided_slice %32 {offsets = [0, 0, 0], sizes = [8, 16, 32], strides = [1, 1, 1]} : vector<8x18x32xf32> to vector<8x16x32xf32>
    %34 = vector.extract_strided_slice %32 {offsets = [0, 1, 0], sizes = [8, 16, 32], strides = [1, 1, 1]} : vector<8x18x32xf32> to vector<8x16x32xf32>
    %35 = vector.extract_strided_slice %32 {offsets = [0, 2, 0], sizes = [8, 16, 32], strides = [1, 1, 1]} : vector<8x18x32xf32> to vector<8x16x32xf32>
    %36 = tpu.concatenate %33, %34, %35 in 2 : vector<8x16x32xf32>, vector<8x16x32xf32>, vector<8x16x32xf32> -> vector<8x16x96xf32>
    %37 = vector.shape_cast %36 : vector<8x16x96xf32> to vector<128x96xf32>
    %c1_29 = arith.constant 1 : index
    %c0_30 = arith.constant 0 : index
    %c0_31 = arith.constant 0 : index
    %38 = vector.load %arg5[%c1_29, %c0_30, %c0_31] : memref<3x96x32xf32, #tpu.memory_space<vmem>>, vector<1x96x32xf32>
    %39 = vector.shape_cast %38 : vector<1x96x32xf32> to vector<96x32xf32>
    %cst_32 = arith.constant dense<0.000000e+00> : vector<128x32xf32>
    %40 = tpu.matmul %37, %39, %cst_32 {dimension_numbers = #tpu.dot_dimension_numbers<[1], [0], [0], [1], [0, 0, 1, 1], [], []>} : vector<128x96xf32>, vector<96x32xf32>, vector<128x32xf32> -> vector<128x32xf32>
    %41 = arith.addf %31, %40 : vector<128x32xf32>
    %c2 = arith.constant 2 : index
    %c0_33 = arith.constant 0 : index
    %c0_34 = arith.constant 0 : index
    %42 = vector.load %arg10[%c2, %c0_33, %c0_34] : memref<10x18x32xf32, #tpu.memory_space<vmem>>, vector<8x18x32xf32>
    %43 = vector.extract_strided_slice %42 {offsets = [0, 0, 0], sizes = [8, 16, 32], strides = [1, 1, 1]} : vector<8x18x32xf32> to vector<8x16x32xf32>
    %44 = vector.extract_strided_slice %42 {offsets = [0, 1, 0], sizes = [8, 16, 32], strides = [1, 1, 1]} : vector<8x18x32xf32> to vector<8x16x32xf32>
    %45 = vector.extract_strided_slice %42 {offsets = [0, 2, 0], sizes = [8, 16, 32], strides = [1, 1, 1]} : vector<8x18x32xf32> to vector<8x16x32xf32>
    %46 = tpu.concatenate %43, %44, %45 in 2 : vector<8x16x32xf32>, vector<8x16x32xf32>, vector<8x16x32xf32> -> vector<8x16x96xf32>
    %47 = vector.shape_cast %46 : vector<8x16x96xf32> to vector<128x96xf32>
    %c2_35 = arith.constant 2 : index
    %c0_36 = arith.constant 0 : index
    %c0_37 = arith.constant 0 : index
    %48 = vector.load %arg5[%c2_35, %c0_36, %c0_37] : memref<3x96x32xf32, #tpu.memory_space<vmem>>, vector<1x96x32xf32>
    %49 = vector.shape_cast %48 : vector<1x96x32xf32> to vector<96x32xf32>
    %cst_38 = arith.constant dense<0.000000e+00> : vector<128x32xf32>
    %50 = tpu.matmul %47, %49, %cst_38 {dimension_numbers = #tpu.dot_dimension_numbers<[1], [0], [0], [1], [0, 0, 1, 1], [], []>} : vector<128x96xf32>, vector<96x32xf32>, vector<128x32xf32> -> vector<128x32xf32>
    %51 = arith.addf %41, %50 : vector<128x32xf32>
    %c0_39 = arith.constant 0 : index
    %c0_40 = arith.constant 0 : index
    %52 = vector.load %arg6[%c0_39, %c0_40] : memref<1x32xf32, #tpu.memory_space<vmem>>, vector<1x32xf32>
    %53 = vector.shape_cast %52 : vector<1x32xf32> to vector<32xf32>
    %54 = vector.shape_cast %53 : vector<32xf32> to vector<1x32xf32>
    %55 = vector.broadcast %54 : vector<1x32xf32> to vector<128x32xf32>
    %56 = arith.addf %51, %55 : vector<128x32xf32>
    %cst_41 = arith.constant 0.000000e+00 : f32
    %57 = vector.broadcast %cst_41 : f32 to vector<128x32xf32>
    %58 = arith.maximumf %56, %57 : vector<128x32xf32>
    %c0_42 = arith.constant 0 : index
    %c0_43 = arith.constant 0 : index
    %59 = vector.load %arg7[%c0_42, %c0_43] : memref<32x128xf32, #tpu.memory_space<vmem>>, vector<32x128xf32>
    %cst_44 = arith.constant dense<0.000000e+00> : vector<128x128xf32>
    %60 = tpu.matmul %58, %59, %cst_44 {dimension_numbers = #tpu.dot_dimension_numbers<[1], [0], [0], [1], [0, 0, 1, 1], [], []>} : vector<128x32xf32>, vector<32x128xf32>, vector<128x128xf32> -> vector<128x128xf32>
    %c0_45 = arith.constant 0 : index
    %c0_46 = arith.constant 0 : index
    %61 = vector.load %arg8[%c0_45, %c0_46] : memref<1x128xf32, #tpu.memory_space<vmem>>, vector<1x128xf32>
    %62 = vector.shape_cast %61 : vector<1x128xf32> to vector<128xf32>
    %63 = vector.shape_cast %62 : vector<128xf32> to vector<1x128xf32>
    %64 = vector.broadcast %63 : vector<1x128xf32> to vector<128x128xf32>
    %65 = arith.addf %60, %64 : vector<128x128xf32>
    %c0_47 = arith.constant 0 : index
    %c0_48 = arith.constant 0 : index
    %c0_49 = arith.constant 0 : index
    %66 = vector.load %arg9[%c0_47, %c0_48, %c0_49] : memref<1x128x128xf32, #tpu.memory_space<vmem>>, vector<1x128x128xf32>
    %67 = vector.shape_cast %66 : vector<1x128x128xf32> to vector<128x128xf32>
    %68 = vector.shape_cast %65 : vector<128x128xf32> to vector<1x128x128xf32>
    tpu.vector_store %arg9[%c0_47, %c0_48, %c0_49], %68 {strides = array<i32>} : memref<1x128x128xf32, #tpu.memory_space<vmem>>, vector<1x128x128xf32>,
    return
  }
  func.func @transform_0(%arg0: i32, %arg1: i32) -> (i32, i32, i32, i32) {
    %c0_i32 = arith.constant 0 : i32
    %c0_i32_0 = arith.constant 0 : i32
    %c0_i32_1 = arith.constant 0 : i32
    return %arg0, %arg1, %c0_i32, %c0_i32_0 : i32, i32, i32, i32
  }
  func.func @transform_1(%arg0: i32, %arg1: i32) -> (i32, i32) {
    %c0_i32 = arith.constant 0 : i32
    %c0_i32_0 = arith.constant 0 : i32
    %c0_i32_1 = arith.constant 0 : i32
    return %c0_i32, %c0_i32_0 : i32, i32
  }
  func.func @transform_2(%arg0: i32, %arg1: i32) -> (i32, i32) {
    %c0_i32 = arith.constant 0 : i32
    %c0_i32_0 = arith.constant 0 : i32
    %c0_i32_1 = arith.constant 0 : i32
    return %c0_i32, %c0_i32_0 : i32, i32
  }
  func.func @transform_3(%arg0: i32, %arg1: i32) -> (i32, i32, i32) {
    %c0_i32 = arith.constant 0 : i32
    %c0_i32_0 = arith.constant 0 : i32
    %c0_i32_1 = arith.constant 0 : i32
    %c0_i32_2 = arith.constant 0 : i32
    return %c0_i32, %c0_i32_0, %c0_i32_1 : i32, i32, i32
  }
  func.func @transform_4(%arg0: i32, %arg1: i32) -> (i32, i32) {
    %c0_i32 = arith.constant 0 : i32
    %c0_i32_0 = arith.constant 0 : i32
    %c0_i32_1 = arith.constant 0 : i32
    return %c0_i32, %c0_i32_0 : i32, i32
  }
  func.func @transform_5(%arg0: i32, %arg1: i32) -> (i32, i32) {
    %c0_i32 = arith.constant 0 : i32
    %c0_i32_0 = arith.constant 0 : i32
    %c0_i32_1 = arith.constant 0 : i32
    return %c0_i32, %c0_i32_0 : i32, i32
  }
  func.func @transform_6(%arg0: i32, %arg1: i32) -> (i32, i32) {
    %c0_i32 = arith.constant 0 : i32
    %c0_i32_0 = arith.constant 0 : i32
    %c0_i32_1 = arith.constant 0 : i32
    return %c0_i32, %c0_i32_0 : i32, i32
  }
  func.func @transform_7(%arg0: i32, %arg1: i32) -> (i32, i32, i32) {
    %c0_i32 = arith.constant 0 : i32
    %c0_i32_0 = arith.constant 0 : i32
    return %arg0, %arg1, %c0_i32 : i32, i32, i32
  }
}

</mosaic_0001>

<bundles_post_ra>
// kernel: tile.8
= control target key start
LH: loop header
LB: loop body
LE: loop exit
PB: predicated region body
PF: predicated region fallthrough
CT: control target
= control target key end

     0   :  { %s22_s0 = inlined_call_operand.vmem [shape: f32[32], index: 0, kind: input, shape index: {}]   ;;  %s23_s1 = inlined_call_operand.vmem [shape: f32[4,32], index: 1, kind: output, shape index: {}]  }
   0x1   :  { %v4_v0 = vld [vmem:[%s22_s0] ss:$0 sm:$0xff] }
   0x2   :  { %5 = vst [vmem:[%s23_s1] sm:$0xf] %v4_v0 }

// kernel: tile.9
= control target key start
LH: loop header
LB: loop body
LE: loop exit
PB: predicated region body
PF: predicated region fallthrough
CT: control target
= control target key end

     0   :  { %vm8_vm0 = vcmask 261120   ;;  %s40_s8 = smov 32   ;;  %s41_s9 = smov 64   ;;  %vm14_vm1 = vcmask 1048320   ;;  %vm20_vm2 = vcmask 785920   ;;  %vm26_vm3 = vcmask 523520   ;;  %s58_s0 = inlined_call_operand.vmem [shape: f32[4,32], index: 0, kind: input, shape index: {}]   ;;  %s59_s1 = inlined_call_operand.vmem [shape: f32[1,128], index: 1, kind: output, shape index: {}]  }
   0x1   :  { %v5_v0 = vld [vmem:[%s58_s0] sm:$0xf]  ;;  %s39_s0 = smov 96  }
   0x2   :  { %6 = vst [vmem:[#allocation1] sm:$0xf] %v5_v0 }
   0x9   :  { %v11_v1 = vld [vmem:[#allocation1 + $0x3] sm:$0x1]   ;;  %v23_v2 = vld [vmem:[#allocation1 + $0x1] sm:$0x1]   ;;  %v7_v3 = vld [vmem:[#allocation1] sm:$0x1]  }
   0xa   :  { %12 = vrot.lane.b32.xlu0 %v11_v1, %s39_s0  ;;  %24 = vrot.lane.b32.xlu1 %v23_v2, %s40_s8  ;;  %v17_v4 = vld [vmem:[#allocation1 + $0x2] sm:$0x1]   ;;  %9 = vst.msk [vmem:[#allocation0] sm:$0x1] %vm8_vm0, %v7_v3  }
   0xe   :  { %18 = vrot.lane.b32.xlu0 %v17_v4, %s41_s9 }
  0x7c   :  { %v13_v5 = vpop.permute.xlu0 %12   ;;  %v25_v6 = vpop.permute.xlu1 %24  }
  0x7d   :  { %15 = vst.msk [vmem:[#allocation0] sm:$0x1] %vm14_vm1, %v13_v5  }
  0x80   :  { %v19_v7 = vpop.permute.xlu0 %18  }
  0x81   :  { %21 = vst.msk [vmem:[#allocation0] sm:$0x1] %vm20_vm2, %v19_v7  }
  0x82   :  { %27 = vst.msk [vmem:[#allocation0] sm:$0x1] %vm26_vm3, %v25_v6  }
  0x89   :  { %v32_v8 = vld [vmem:[#allocation0] sm:$0x1] }
  0x8a   :  { %35 = vst [vmem:[%s59_s1] sm:$0x1] %v32_v8 }

// kernel: up_conv_forward.1
= control target key start
LH: loop header
LB: loop body
LE: loop exit
PB: predicated region body
PF: predicated region fallthrough
CT: control target
= control target key end

     0   :  { %s3015_s24 = smov 0   ;;  %s3017_s25 = smov 0   ;;  %s4077_s0 = inlined_call_operand.vmem [shape: f32[2,2,160,16], index: 0, kind: input, shape index: {}]   ;;  %s4078_s1 = inlined_call_operand.vmem [shape: f32[16,32], index: 1, kind: input, shape index: {}]   ;;  %s4079_s2 = inlined_call_operand.vmem [shape: f32[1,32], index: 2, kind: input, shape index: {}]   ;;  %s4080_s3 = inlined_call_operand.vmem [shape: f32[3,96,32], index: 3, kind: input, shape index: {}]   ;;  %s4081_s4 = inlined_call_operand.vmem [shape: f32[1,32], index: 4, kind: input, shape index: {}]   ;;  %s4082_s5 = inlined_call_operand.vmem [shape: f32[32,128], index: 5, kind: input, shape index: {}]   ;;  %s4083_s6 = inlined_call_operand.vmem [shape: f32[1,128], index: 6, kind: input, shape index: {}]   ;;  %s4084_s7 = inlined_call_operand.vmem [shape: f32[2,256,128], index: 7, kind: output, shape index: {}]  }
   0x1   :  { %s3019_s26 = smov 0   ;;  %s3021_s27 = smov 0  }
   0x2   :  { %s3023_s28 = smov 0  }
   0x3 LB: > { %s26_s29 = sadd.s32 1, %s2960_s26  ;;  %s29_s30 = sadd.s32 1, %s2964_s27  ;;  %s2968_s28 = sphi %s3023_s28, %s17_s28   ;;  %s2964_s27 = sphi %s3021_s27, %s4126_s27   ;;  %s2960_s26 = sphi %s3019_s26, %s4125_s26   ;;  %s2956_s25 = sphi %s3017_s25, %s4124_s25   ;;  %s2952_s24 = sphi %s3015_s24, %s4123_s24  }
   0x4   : > { %p27_p0 = scmp.ge.s32.totalorder %s26_s29, 2  ;;  %p2413_p1 = scmp.ge.s32.totalorder %s2968_s28, 1 }
   0x5   : > { %p257_p2 = scmp.lt.s32.totalorder %s2968_s28, 5 }
   0x6   : > { %s4128_s29 = smov (%p27_p0, %s26_s29), 0  ;;  %s4130_s30 = smov (!%p27_p0, %s29_s30), %s2964_s27 }
   0x7   : > { %p258_p3 = pnand %p2413_p1, %p257_p2  ;;  %p31_p4 = scmp.ge.s32.totalorder %s4130_s30, 2 }
   0x9   : > { %s4132_s30 = smov (%p31_p4, %s4130_s30), 0  ;;  %261 = sbr.rel (%p258_p3) target bundleno = 968 (0x3c8), region = 48 }
   0xe   : > { %v337_v0 = vld [vmem:[%s4078_s1 + $0x8] sm:$0xff]  ;;  %v336_v1 = vld [vmem:[%s4078_s1] sm:$0xff]  ;;  %p297_p5 = scmp.lt.s32.totalorder %s2956_s25, 1  ;;  %p299_p6 = scmp.lt.s32.totalorder %s2952_s24, 1  ;;  %vm345_vm0 = vcmask 130048   ;;  %vm612_vm1 = vcmask 253952  }
   0xf   : > { %2659 = vmatprep.subr.mxu0 %v337_v0  ;;  %s2415_s12 = sshll.u32 %s2952_s24, 4  ;;  %2869 = vmatprep.subr.mxu1 %v337_v0  ;;  %v2970_v22 = vmov 0.0   ;;  %v3129_v23 = vld [vmem:[%s4079_s2] ss:$0 sm:$0xff]  ;;  %vm591_vm2 = vcmask 261120   ;;  %p2439_p8 = scmp.ne.s32.totalorder %s2952_s24, 0 }
  0x10   : > { %2660 = vmatpush3.msra.mxu0 %v337_v0  ;;  %s4134_s25 = smov (!%p297_p5, %s2956_s25), 1  ;;  %2871 = vmatpush3.msra.mxu1 %v337_v0  ;;  %p309_p7 = scmp.lt.s32.totalorder %s2415_s12, 31  ;;  %613 = vst.msk [vmem:[#allocation2] sm:$0x1] %vm612_vm1, %v2970_v22  ;;  %614 = vst.msk [vmem:[#allocation2 + $0x18] sm:$0x1] %vm612_vm1, %v2970_v22 }
  0x11   : > { %2661 = vmatprep.subr.mxu0 %v336_v1  ;;  %s300_s13 = scalar_select %p299_p6, %s2952_s24, 1  ;;  %2870 = vmatprep.subr.mxu1 %v336_v1  ;;  %615 = vst.msk [vmem:[#allocation2 + $0x30] sm:$0x1] %vm612_vm1, %v2970_v22  ;;  %616 = vst.msk [vmem:[#allocation2 + $0x48] sm:$0x1] %vm612_vm1, %v2970_v22 }
  0x12   : > { %2662 = vmatpush3.msra.mxu0 %v336_v1  ;;  %s2874_s14 = smul.u32 40, %s4134_s25  ;;  %2872 = vmatpush3.msra.mxu1 %v336_v1  ;;  %s2416_s16 = sshll.u32 %s4134_s25, 5  ;;  %617 = vst.msk [vmem:[#allocation2 + $0x60] sm:$0x1] %vm612_vm1, %v2970_v22  ;;  %618 = vst.msk [vmem:[#allocation2 + $0x78] sm:$0x1] %vm612_vm1, %v2970_v22 }
  0x13   : > { %s2873_s15 = smul.u32 20, %s300_s13  ;;  %s4136_s12 = smov (!%p309_p7, %s2415_s12), 31  ;;  %619 = vst.msk [vmem:[#allocation2 + $0x90] sm:$0x1] %vm612_vm1, %v2970_v22  ;;  %620 = vst.msk [vmem:[#allocation2 + $0xa8] sm:$0x1] %vm612_vm1, %v2970_v22 }
  0x14   : > { %s312_s19 = sadd.s32 %s2416_s16, %s4136_s12  ;;  %621 = vst.msk [vmem:[#allocation2 + $0xc0] sm:$0x1] %vm612_vm1, %v2970_v22  ;;  %622 = vst.msk [vmem:[#allocation2 + $0xd8] sm:$0x1] %vm612_vm1, %v2970_v22 }
  0x15   : > { %s303_s17 = sadd.s32 %s2874_s14, %s2873_s15  ;;  %s2417_s23 = sshll.u32 %s312_s19, 3  ;;  %623 = vst.msk [vmem:[#allocation2 + $0x11] sm:$0x1] %vm612_vm1, %v2970_v22  ;;  %624 = vst.msk [vmem:[#allocation2 + $0x29] sm:$0x1] %vm612_vm1, %v2970_v22 }
  0x16   : > { %s2414_s18 = sshll.u32 %s303_s17, 3  ;;  %s3064_s9 = scalar_lea.vmem %s4084_s7, %s2417_s23  ;;  %625 = vst.msk [vmem:[#allocation2 + $0x41] sm:$0x1] %vm612_vm1, %v2970_v22  ;;  %626 = vst.msk [vmem:[#allocation2 + $0x59] sm:$0x1] %vm612_vm1, %v2970_v22 }
  0x17   : > { %s3059_s22 = scalar_lea.vmem %s4077_s0, %s2414_s18  ;;  %627 = vst.msk [vmem:[#allocation2 + $0x71] sm:$0x1] %vm612_vm1, %v2970_v22  ;;  %628 = vst.msk [vmem:[#allocation2 + $0x89] sm:$0x1] %vm612_vm1, %v2970_v22 }
  0x18   : > { %v316_v2 = vld [vmem:[%s3059_s22] sm:$0xff]  ;;  %v317_v3 = vld [vmem:[%s3059_s22 + $0x8] sm:$0xff]  ;;  %v318_v4 = vld [vmem:[%s3059_s22 + $0x10] sm:$0xff]  ;;  %629 = vst.msk [vmem:[#allocation2 + $0xa1] sm:$0x1] %vm612_vm1, %v2970_v22 }
  0x19   : > { %2663 = vmatprep.mubr.msk.f32.mxu0 %vm345_vm0, %v316_v2  ;;  %v328_v5 = vld [vmem:[%s3059_s22 + $0x60] sm:$0xff]  ;;  %v329_v6 = vld [vmem:[%s3059_s22 + $0x68] sm:$0xff]  ;;  %v330_v7 = vld [vmem:[%s3059_s22 + $0x70] sm:$0xff]  ;;  %630 = vst.msk [vmem:[#allocation2 + $0xb9] sm:$0x1] %vm612_vm1, %v2970_v22 }
  0x1a   : > { %2664 = vmatmul.mubr.msk.f32.vlgmr.msra.gmra.mxu0 %vm345_vm0, %v317_v3  ;;  %2681 = vmatprep.mubr.msk.f32.mxu1 %vm345_vm0, %v328_v5  ;;  %v319_v8 = vld [vmem:[%s3059_s22 + $0x18] sm:$0xff]  ;;  %v320_v9 = vld [vmem:[%s3059_s22 + $0x20] sm:$0xff]  ;;  %v321_v12 = vld [vmem:[%s3059_s22 + $0x28] sm:$0xff]  ;;  %631 = vst.msk [vmem:[#allocation2 + $0xd1] sm:$0x1] %vm612_vm1, %v2970_v22 }
  0x1b   : > { %2666 = vmatprep.mubr.msk.f32.mxu0 %vm345_vm0, %v318_v4  ;;  %2682 = vmatmul.mubr.msk.f32.vlgmr.msra.gmra.mxu1 %vm345_vm0, %v329_v6  ;;  %v331_v10 = vld [vmem:[%s3059_s22 + $0x78] sm:$0xff]  ;;  %v332_v11 = vld [vmem:[%s3059_s22 + $0x80] sm:$0xff]  ;;  %v322_v13 = vld [vmem:[%s3059_s22 + $0x30] sm:$0xff]  ;;  %632 = vst.msk [vmem:[#allocation2 + $0xe9] sm:$0x1] %vm612_vm1, %v2970_v22 }
  0x1c   : > { %2684 = vmatprep.mubr.msk.f32.mxu1 %vm345_vm0, %v330_v7  ;;  %v333_v14 = vld [vmem:[%s3059_s22 + $0x88] sm:$0xff]  ;;  %v334_v15 = vld [vmem:[%s3059_s22 + $0x90] sm:$0xff]  ;;  %v323_v16 = vld [vmem:[%s3059_s22 + $0x38] sm:$0xff] }
  0x1d   : > { %v324_v17 = vld [vmem:[%s3059_s22 + $0x40] sm:$0xff]  ;;  %v335_v18 = vld [vmem:[%s3059_s22 + $0x98] sm:$0xff]  ;;  %v325_v19 = vld [vmem:[%s3059_s22 + $0x48] sm:$0xff] }
  0x1e   : > { %2667 = vmatmul.mubr.msk.f32.gmra.mxu0 %vm345_vm0, %v319_v8  ;;  %v326_v20 = vld [vmem:[%s3059_s22 + $0x50] sm:$0xff]  ;;  %v327_v21 = vld [vmem:[%s3059_s22 + $0x58] sm:$0xff] }
  0x1f   : > { %2669 = vmatprep.mubr.msk.f32.mxu0 %vm345_vm0, %v320_v9  ;;  %2685 = vmatmul.mubr.msk.f32.gmra.mxu1 %vm345_vm0, %v331_v10 }
  0x20   : > { %2687 = vmatprep.mubr.msk.f32.mxu1 %vm345_vm0, %v332_v11 }
  0x22   : > { %2670 = vmatmul.mubr.msk.f32.gmra.mxu0 %vm345_vm0, %v321_v12 }
  0x23   : > { %2672 = vmatprep.mubr.msk.f32.mxu0 %vm345_vm0, %v322_v13  ;;  %2688 = vmatmul.mubr.msk.f32.gmra.mxu1 %vm345_vm0, %v333_v14 }
  0x24   : > { %2690 = vmatprep.mubr.msk.f32.mxu1 %vm345_vm0, %v334_v15 }
  0x26   : > { %2673 = vmatmul.mubr.msk.f32.gmra.mxu0 %vm345_vm0, %v323_v16 }
  0x27   : > { %2675 = vmatprep.mubr.msk.f32.mxu0 %vm345_vm0, %v324_v17  ;;  %2691 = vmatmul.mubr.msk.f32.gmra.mxu1 %vm345_vm0, %v335_v18 }
  0x2a   : > { %2676 = vmatmul.mubr.msk.f32.gmra.mxu0 %vm345_vm0, %v325_v19 }
  0x2b   : > { %2678 = vmatprep.mubr.msk.f32.mxu0 %vm345_vm0, %v326_v20 }
  0x2e   : > { %2679 = vmatmul.mubr.msk.f32.gmra.mxu0 %vm345_vm0, %v327_v21 }
  0xda   : > { %v2665_v24 = vpop.f32.mrf.mxu0 }
  0xdb   : > { %v478_v25 = vadd.f32 %v2665_v24, %v3129_v23  ;;  %v2683_v26 = vpop.f32.mrf.mxu1 }
  0xdc   : > { %v472_v27 = vpop.f32.mrf.mxu0  ;;  %v538_v28 = vadd.f32 %v2683_v26, %v3129_v23 }
  0xdd   : > { %v572_v29 = vmax.f32 %v478_v25, 0.0  ;;  %v473_v30 = vadd.f32 %v3129_v23, %v472_v27  ;;  %v532_v31 = vpop.f32.mrf.mxu1 }
  0xde   : > { %v2668_v32 = vpop.f32.mrf.mxu0  ;;  %v584_v33 = vmax.f32 %v538_v28, 0.0  ;;  %v533_v34 = vadd.f32 %v3129_v23, %v532_v31 }
  0xdf   : > { %593 = vst.msk [vmem:[#allocation2 + $0x9] sm:$0xff] %vm591_vm2, %v572_v29  ;;  %v571_v35 = vmax.f32 %v473_v30, 0.0  ;;  %v488_v36 = vadd.f32 %v2668_v32, %v3129_v23  ;;  %v2686_v37 = vpop.f32.mrf.mxu1 }
  0xe0   : > { %v482_v38 = vpop.f32.mrf.mxu0  ;;  %605 = vst.msk [vmem:[#allocation2 + $0x99] sm:$0xff] %vm591_vm2, %v584_v33  ;;  %v583_v39 = vmax.f32 %v533_v34, 0.0  ;;  %v548_v40 = vadd.f32 %v2686_v37, %v3129_v23 }
  0xe1   : > { %592 = vst.msk [vmem:[#allocation2 + $0x1] sm:$0xff] %vm591_vm2, %v571_v35  ;;  %v574_v41 = vmax.f32 %v488_v36, 0.0  ;;  %v483_v42 = vadd.f32 %v3129_v23, %v482_v38  ;;  %v542_v43 = vpop.f32.mrf.mxu1 }
  0xe2   : > { %v2671_v44 = vpop.f32.mrf.mxu0  ;;  %604 = vst.msk [vmem:[#allocation2 + $0x91] sm:$0xff] %vm591_vm2, %v583_v39  ;;  %v586_v45 = vmax.f32 %v548_v40, 0.0  ;;  %v543_v46 = vadd.f32 %v3129_v23, %v542_v43 }
  0xe3   : > { %595 = vst.msk [vmem:[#allocation2 + $0x21] sm:$0xff] %vm591_vm2, %v574_v41  ;;  %v573_v47 = vmax.f32 %v483_v42, 0.0  ;;  %v498_v48 = vadd.f32 %v2671_v44, %v3129_v23  ;;  %v2689_v49 = vpop.f32.mrf.mxu1 }
  0xe4   : > { %v492_v50 = vpop.f32.mrf.mxu0  ;;  %607 = vst.msk [vmem:[#allocation2 + $0xb1] sm:$0xff] %vm591_vm2, %v586_v45  ;;  %v585_v51 = vmax.f32 %v543_v46, 0.0  ;;  %v558_v52 = vadd.f32 %v2689_v49, %v3129_v23 }
  0xe5   : > { %594 = vst.msk [vmem:[#allocation2 + $0x19] sm:$0xff] %vm591_vm2, %v573_v47  ;;  %v576_v53 = vmax.f32 %v498_v48, 0.0  ;;  %v493_v54 = vadd.f32 %v3129_v23, %v492_v50  ;;  %v552_v55 = vpop.f32.mrf.mxu1 }
  0xe6   : > { %v2674_v56 = vpop.f32.mrf.mxu0  ;;  %606 = vst.msk [vmem:[#allocation2 + $0xa9] sm:$0xff] %vm591_vm2, %v585_v51  ;;  %v588_v57 = vmax.f32 %v558_v52, 0.0  ;;  %v553_v58 = vadd.f32 %v3129_v23, %v552_v55 }
  0xe7   : > { %597 = vst.msk [vmem:[#allocation2 + $0x39] sm:$0xff] %vm591_vm2, %v576_v53  ;;  %v575_v59 = vmax.f32 %v493_v54, 0.0  ;;  %v508_v60 = vadd.f32 %v2674_v56, %v3129_v23  ;;  %v2692_v61 = vpop.f32.mrf.mxu1 }
  0xe8   : > { %v502_v62 = vpop.f32.mrf.mxu0  ;;  %609 = vst.msk [vmem:[#allocation2 + $0xc9] sm:$0xff] %vm591_vm2, %v588_v57  ;;  %v587_v63 = vmax.f32 %v553_v58, 0.0  ;;  %v568_v0 = vadd.f32 %v2692_v61, %v3129_v23 }
  0xe9   : > { %596 = vst.msk [vmem:[#allocation2 + $0x31] sm:$0xff] %vm591_vm2, %v575_v59  ;;  %v578_v1 = vmax.f32 %v508_v60, 0.0  ;;  %v503_v2 = vadd.f32 %v3129_v23, %v502_v62  ;;  %v562_v3 = vpop.f32.mrf.mxu1 }
  0xea   : > { %v2677_v4 = vpop.f32.mrf.mxu0  ;;  %608 = vst.msk [vmem:[#allocation2 + $0xc1] sm:$0xff] %vm591_vm2, %v587_v63  ;;  %v590_v5 = vmax.f32 %v568_v0, 0.0  ;;  %v563_v6 = vadd.f32 %v3129_v23, %v562_v3 }
  0xeb   : > { %599 = vst.msk [vmem:[#allocation2 + $0x51] sm:$0xff] %vm591_vm2, %v578_v1  ;;  %v577_v7 = vmax.f32 %v503_v2, 0.0  ;;  %v518_v8 = vadd.f32 %v2677_v4, %v3129_v23 }
  0xec   : > { %v512_v9 = vpop.f32.mrf.mxu0  ;;  %611 = vst.msk [vmem:[#allocation2 + $0xe1] sm:$0xff] %vm591_vm2, %v590_v5  ;;  %v589_v10 = vmax.f32 %v563_v6, 0.0 }
  0xed   : > { %598 = vst.msk [vmem:[#allocation2 + $0x49] sm:$0xff] %vm591_vm2, %v577_v7  ;;  %v580_v11 = vmax.f32 %v518_v8, 0.0  ;;  %v513_v12 = vadd.f32 %v3129_v23, %v512_v9 }
  0xee   : > { %v2680_v13 = vpop.f32.mrf.mxu0  ;;  %610 = vst.msk [vmem:[#allocation2 + $0xd9] sm:$0xff] %vm591_vm2, %v589_v10 }
  0xef   : > { %601 = vst.msk [vmem:[#allocation2 + $0x69] sm:$0xff] %vm591_vm2, %v580_v11  ;;  %v579_v14 = vmax.f32 %v513_v12, 0.0  ;;  %v528_v15 = vadd.f32 %v2680_v13, %v3129_v23 }
  0xf0   : > { %v522_v16 = vpop.f32.mrf.mxu0 }
  0xf1   : > { %600 = vst.msk [vmem:[#allocation2 + $0x61] sm:$0xff] %vm591_vm2, %v579_v14  ;;  %v582_v17 = vmax.f32 %v528_v15, 0.0  ;;  %v523_v18 = vadd.f32 %v3129_v23, %v522_v16  ;;  %636 = sbr.rel (%p2439_p8) target bundleno = 249 (0xf9), region = 52 }
  0xf3   : > { %603 = vst.msk [vmem:[#allocation2 + $0x81] sm:$0xff] %vm591_vm2, %v582_v17  ;;  %v581_v19 = vmax.f32 %v523_v18, 0.0 }
  0xf5   : > { %602 = vst.msk [vmem:[#allocation2 + $0x79] sm:$0xff] %vm591_vm2, %v581_v19 }
  0xf6   : > { %vm639_vm3 = vcmask 254976   ;;  %v2971_v20 = vmov 0.0  }
  0xf7   : > { %637 = vst.msk [vmem:[#allocation2] sm:$0xff] %vm591_vm2, %v2971_v20  ;;  %638 = vst.msk [vmem:[#allocation2 + $0x8] sm:$0xff] %vm591_vm2, %v2971_v20 }
  0xf8   : > { %640 = vst.msk [vmem:[#allocation2 + $0x10] sm:$0x3] %vm639_vm3, %v2971_v20 }
  0xf9 PF: > { %p2440_p9 = scmp.ne.s32.totalorder %s2952_s24, 1 }
  0xfb   : > { %644 = sbr.rel (%p2440_p9) target bundleno = 259 (0x103), region = 56 }
 0x100   : > { %vm648_vm4 = vcmask 254976   ;;  %v2972_v21 = vmov 0.0  }
 0x101   : > { %646 = vst.msk [vmem:[#allocation2 + $0xd8] sm:$0xff] %vm591_vm2, %v2972_v21  ;;  %647 = vst.msk [vmem:[#allocation2 + $0xe0] sm:$0xff] %vm591_vm2, %v2972_v21 }
 0x102   : > { %649 = vst.msk [vmem:[#allocation2 + $0xe8] sm:$0x3] %vm648_vm4, %v2972_v21 }
 0x103 PF: > { %vm787_vm5 = vcmask 1045504   ;;  %v3177_v22 = vld [vmem:[#allocation2 + $0x18] sm:$0xff]  ;;  %v3179_v23 = vld [vmem:[#allocation2 + $0x20] sm:$0xff]  ;;  %vm698_vm6 = vcmask 1046528   ;;  %v924_v28 = vld [vmem:[#allocation2 + $0x28] sm:$0x3] }
 0x104   : > { %v1058_v24 = vrot.slane %v3177_v22, 2  ;;  %v3183_v25 = vrot.slane %v3179_v23, 2  ;;  %v970_v26 = vrot.slane %v3177_v22, 1  ;;  %v3187_v27 = vrot.slane %v3179_v23, 1  ;;  %v3189_v31 = vld [vmem:[#allocation2 + $0x38] sm:$0xff]  ;;  %v3191_v33 = vld [vmem:[#allocation2 + $0x30] sm:$0xff] }
 0x105   : > { %v1061_v29 = vrot.slane %v924_v28, 2  ;;  %v973_v30 = vrot.slane %v924_v28, 1  ;;  %v927_v32 = vld [vmem:[#allocation2 + $0x40] sm:$0x3]  ;;  %s2973_s24 = smov 64   ;;  %s2974_s12 = smov 32  }
 0x106   : > { %v3195_v34 = vsel %vm787_vm5, %v1058_v24, %v3183_v25  ;;  %v3199_v35 = vsel %vm698_vm6, %v970_v26, %v3187_v27  ;;  %v3206_v36 = vrot.slane %v3189_v31, 1  ;;  %v978_v39 = vrot.slane %v927_v32, 1  ;;  %v3225_v46 = vld [vmem:[#allocation2 + $0x50] sm:$0xff]  ;;  %v930_v47 = vld [vmem:[#allocation2 + $0x58] sm:$0x3]  ;;  %v3227_v48 = vld [vmem:[#allocation2 + $0x48] sm:$0xff] }
 0x107   : > { %1098 = vrot.lane.b32.xlu1 %v3195_v34, %s2973_s24  ;;  %1010 = vrot.lane.b32.xlu0 %v3199_v35, %s2974_s12  ;;  %v1062_v37 = vsel %vm787_vm5, %v3183_v25, %v1061_v29  ;;  %v974_v38 = vsel %vm698_vm6, %v3187_v27, %v973_v30  ;;  %v975_v40 = vrot.slane %v3191_v33, 1  ;;  %v3216_v41 = vrot.slane %v3189_v31, 2  ;;  %v2452_v49 = vld [vmem:[%s4080_s3 + $0xb8] sm:$0xff]  ;;  %v2451_v50 = vld [vmem:[%s4080_s3 + $0xb0] sm:$0xff]  ;;  %v3248_v56 = vld [vmem:[#allocation2 + $0x68] sm:$0xff] }
 0x108   : > { %v979_v42 = vsel %vm698_vm6, %v3206_v36, %v978_v39  ;;  %v1066_v44 = vrot.slane %v927_v32, 2  ;;  %v1063_v45 = vrot.slane %v3191_v33, 2  ;;  %2693 = vmatprep.subr.mxu1 %v2452_v49  ;;  %v3239_v51 = vrot.slane %v3225_v46, 1  ;;  %v933_v57 = vld [vmem:[#allocation2 + $0x70] sm:$0x3]  ;;  %v3250_v58 = vld [vmem:[#allocation2 + $0x60] sm:$0xff] }
 0x109   : > { %v3222_v43 = vsel %vm698_vm6, %v975_v40, %v3206_v36  ;;  %v983_v52 = vrot.slane %v930_v47, 1  ;;  %v980_v55 = vrot.slane %v3227_v48, 1  ;;  %2694 = vmatpush3.msra.mxu1 %v2452_v49  ;;  %v2450_v59 = vld [vmem:[%s4080_s3 + $0xa8] sm:$0xff]  ;;  %v3255_v60 = vld [vmem:[#allocation2 + $0x80] sm:$0xff]  ;;  %v3263_v62 = vrot.slane %v3225_v46, 2  ;;  %v3279_v7 = vld [vmem:[#allocation2 + $0x78] sm:$0xff] }
 0x10a   : > { %v1067_v53 = vsel %vm787_vm5, %v3216_v41, %v1066_v44  ;;  %v3245_v54 = vsel %vm787_vm5, %v1063_v45, %v3216_v41  ;;  %2695 = vmatprep.subr.mxu1 %v2451_v50  ;;  %v1071_v63 = vrot.slane %v930_v47, 2  ;;  %v1068_v0 = vrot.slane %v3227_v48, 2  ;;  %v3266_v1 = vld [vmem:[#allocation2 + $0x88] sm:$0x3]  ;;  %v2449_v2 = vld [vmem:[%s4080_s3 + $0xa0] sm:$0xff]  ;;  %v2448_v13 = vld [vmem:[%s4080_s3 + $0x98] sm:$0xff] }
 0x10b   : > { %1100 = vrot.lane.b32.xlu1 %v1062_v37, %s2973_s24  ;;  %1012 = vrot.lane.b32.xlu0 %v974_v38, %s2974_s12  ;;  %v984_v61 = vsel %vm698_vm6, %v3239_v51, %v983_v52  ;;  %v3273_v3 = vsel %vm698_vm6, %v980_v55, %v3239_v51  ;;  %v3276_v4 = vrot.slane %v3248_v56, 1  ;;  %v988_v5 = vrot.slane %v933_v57, 1  ;;  %v3298_v16 = vld [vmem:[#allocation2 + $0x98] sm:$0xff]  ;;  %v1581_v17 = vld [vmem:[#allocation2 + $0x40] sm:$0x3]  ;;  %v2447_v37 = vld [vmem:[%s4080_s3 + $0x90] sm:$0xff] }
 0x10c   : > { %2696 = vmatpush3.msra.mxu1 %v2451_v50  ;;  %v985_v6 = vrot.slane %v3250_v58, 1  ;;  %v3282_v8 = vrot.slane %v3248_v56, 2  ;;  %v1076_v9 = vrot.slane %v933_v57, 2  ;;  %v1073_v10 = vrot.slane %v3250_v58, 2  ;;  %4097 = vst [vmem:[#allocation3_spill] sm:$0xff] %v3298_v16 }
 0x10d   : > { %2697 = vmatprep.subr.mxu1 %v2450_v59  ;;  %v3286_v11 = vrot.slane %v3255_v60, 1  ;;  %v993_v12 = vrot.slane %v3266_v1, 1  ;;  %v1072_v14 = vsel %vm787_vm5, %v3263_v62, %v1071_v63  ;;  %v990_v15 = vrot.slane %v3279_v7, 1  ;;  %v655_v24 = vld [vmem:[#allocation2 + $0x28] sm:$0x3] }
 0x10e   : > { %2698 = vmatpush3.msra.mxu1 %v2450_v59  ;;  %v3302_v18 = vsel %vm787_vm5, %v1068_v0, %v3263_v62  ;;  %v989_v19 = vsel %vm698_vm6, %v3276_v4, %v988_v5  ;;  %v3308_v20 = vsel %vm698_vm6, %v985_v6, %v3276_v4  ;;  %v3311_v21 = vrot.slane %v3255_v60, 2  ;;  %v1584_v32 = vld [vmem:[#allocation2 + $0x58] sm:$0x3]  ;;  %v658_v44 = vld [vmem:[#allocation2 + $0x40] sm:$0x3]  ;;  %v3354_v0 = vld [vmem:[#allocation2 + $0xb0] sm:$0xff] }
 0x10f   : > { %1016 = vrot.lane.b32.xlu1 %v979_v42, %s2974_s12  ;;  %1014 = vrot.lane.b32.xlu0 %v3222_v43, %s2974_s12  ;;  %v3315_v26 = vsel %vm787_vm5, %v3282_v8, %v1076_v9  ;;  %v3319_v28 = vsel %vm787_vm5, %v1073_v10, %v3282_v8  ;;  %v1081_v29 = vrot.slane %v3266_v1, 2  ;;  %v1078_v30 = vrot.slane %v3279_v7, 2  ;;  %v1587_v52 = vld [vmem:[#allocation2 + $0x70] sm:$0x3]  ;;  %v661_v63 = vld [vmem:[#allocation2 + $0x58] sm:$0x3] }
 0x110   : > { %2699 = vmatprep.subr.mxu1 %v2449_v2  ;;  %v3328_v38 = vsel %vm698_vm6, %v3286_v11, %v993_v12  ;;  %v3331_v39 = vrot.slane %v3298_v16, 1  ;;  %v1630_v40 = vrot.slane %v1581_v17, 1  ;;  %v1718_v42 = vrot.slane %v1581_v17, 2  ;;  %4098 = vst [vmem:[#allocation4_spill] sm:$0xff] %v3354_v0  ;;  %v920_v1 = vld [vmem:[%s4080_s3 + $0x58] sm:$0xff] }
 0x111   : > { %2700 = vmatpush3.msra.mxu1 %v2449_v2  ;;  %v3338_v45 = vsel %vm698_vm6, %v990_v15, %v3286_v11  ;;  %v3341_v47 = vrot.slane %v3298_v16, 2  ;;  %v707_v49 = vrot.slane %v655_v24, 1  ;;  %v796_v50 = vrot.slane %v655_v24, 2  ;;  %2741 = vmatprep.subr.mxu0 %v920_v1 }
 0x112   : > { %2701 = vmatprep.subr.mxu1 %v2448_v13  ;;  %v3348_v55 = vsel %vm698_vm6, %v3206_v36, %v1630_v40  ;;  %v3352_v57 = vsel %vm787_vm5, %v3216_v41, %v1718_v42  ;;  %v1635_v59 = vrot.slane %v1584_v32, 1  ;;  %v712_v6 = vrot.slane %v658_v44, 1  ;;  %v1593_v40 = vld [vmem:[#allocation2 + $0xa0] sm:$0x3]  ;;  %2742 = vmatpush3.msra.mxu0 %v920_v1  ;;  %v1599_v1 = vld [vmem:[#allocation2 + $0xd0] sm:$0x3] }
 0x113   : > { %1104 = vrot.lane.b32.xlu1 %v1067_v53, %s2973_s24  ;;  %1102 = vrot.lane.b32.xlu0 %v3245_v54, %s2973_s24  ;;  %v2446_v53 = vld [vmem:[%s4080_s3 + $0x88] sm:$0xff]  ;;  %v3358_v2 = vsel %vm698_vm6, %v3187_v27, %v707_v49  ;;  %v3362_v5 = vsel %vm787_vm5, %v3183_v25, %v796_v50  ;;  %v801_v9 = vrot.slane %v658_v44, 2  ;;  %v2445_v27 = vld [vmem:[%s4080_s3 + $0x80] sm:$0xff]  ;;  %v717_v24 = vrot.slane %v661_v63, 1 }
 0x114   : > { %2702 = vmatpush3.msra.mxu1 %v2448_v13  ;;  %v3366_v10 = vsel %vm698_vm6, %v3239_v51, %v1635_v59  ;;  %v1640_v13 = vrot.slane %v1587_v52, 1  ;;  %v1590_v25 = vld [vmem:[#allocation2 + $0x88] sm:$0x3]  ;;  %v3380_v15 = vsel %vm698_vm6, %v3206_v36, %v712_v6  ;;  %v3387_v42 = vrot.slane %v3354_v0, 1  ;;  %v2444_v50 = vld [vmem:[%s4080_s3 + $0x78] sm:$0xff] }
 0x115   : > { %2703 = vmatprep.subr.mxu1 %v2447_v37  ;;  %v3384_v17 = vsel %vm787_vm5, %v3216_v41, %v801_v9  ;;  %v667_v41 = vld [vmem:[#allocation2 + $0x88] sm:$0x3]  ;;  %v3402_v49 = vsel %vm698_vm6, %v3239_v51, %v717_v24  ;;  %v1645_v59 = vrot.slane %v1590_v25, 1  ;;  %v1650_v6 = vrot.slane %v1593_v40, 1  ;;  %v2443_v51 = vld [vmem:[%s4080_s3 + $0x70] sm:$0xff] }
 0x116   : > { %2704 = vmatpush3.msra.mxu1 %v2447_v37  ;;  %v664_v37 = vld [vmem:[#allocation2 + $0x70] sm:$0x3]  ;;  %v3394_v44 = vsel %vm698_vm6, %v3276_v4, %v1640_v13  ;;  %v1738_v9 = vrot.slane %v1593_v40, 2  ;;  %v1596_v13 = vld [vmem:[#allocation2 + $0xb8] sm:$0x3]  ;;  %v1748_v16 = vrot.slane %v1599_v1, 2 }
 0x117   : > { %1020 = vrot.lane.b32.xlu1 %v984_v61, %s2974_s12  ;;  %1018 = vrot.lane.b32.xlu0 %v3273_v3, %s2974_s12  ;;  %v1723_v61 = vrot.slane %v1584_v32, 2  ;;  %v806_v32 = vrot.slane %v661_v63, 2  ;;  %v811_v63 = vrot.slane %v664_v37, 2  ;;  %v939_v24 = vld [vmem:[#allocation2 + $0xa0] sm:$0x3]  ;;  %vm892_vm7 = vcmask 523264  }
 0x118   : > { %2705 = vmatprep.subr.mxu1 %v2446_v53  ;;  %v3440_v40 = vsel %vm787_vm5, %v3341_v47, %v1738_v9  ;;  %vm1191_vm8 = vcmask 785408  }
 0x119   : > { %v3370_v12 = vsel %vm787_vm5, %v3263_v62, %v1723_v61  ;;  %2706 = vmatpush3.msra.mxu1 %v2446_v53  ;;  %v1733_v53 = vrot.slane %v1590_v25, 2  ;;  %v722_v61 = vrot.slane %v664_v37, 1  ;;  %v816_v25 = vrot.slane %v667_v41, 2 }
 0x11a   : > { %2707 = vmatprep.subr.mxu1 %v2445_v27  ;;  %v3436_v37 = vsel %vm698_vm6, %v3331_v39, %v1650_v6 }
 0x11b   : > { %1108 = vrot.lane.b32.xlu1 %v1072_v14, %s2973_s24  ;;  %1106 = vrot.lane.b32.xlu0 %v3302_v18, %s2973_s24  ;;  %v1728_v14 = vrot.slane %v1587_v52, 2  ;;  %v3409_v52 = vsel %vm787_vm5, %v3263_v62, %v806_v32  ;;  %v3420_v62 = vsel %vm698_vm6, %v3286_v11, %v1645_v59  ;;  %v3432_v32 = vsel %vm787_vm5, %v3282_v8, %v811_v63  ;;  %v670_v59 = vld [vmem:[#allocation2 + $0xa0] sm:$0x3]  ;;  %v2442_v63 = vld [vmem:[%s4080_s3 + $0x68] sm:$0xff] }
 0x11c   : > { %2708 = vmatpush3.msra.mxu1 %v2445_v27  ;;  %v3424_v27 = vsel %vm787_vm5, %v3311_v21, %v1733_v53  ;;  %v1655_v53 = vrot.slane %v1596_v13, 1  ;;  %v732_v6 = vrot.slane %v670_v59, 1 }
 0x11d   : > { %v3398_v36 = vsel %vm787_vm5, %v3282_v8, %v1728_v14  ;;  %v727_v14 = vrot.slane %v667_v41, 1  ;;  %2709 = vmatprep.subr.mxu1 %v2444_v50  ;;  %v3442_v41 = vld [vmem:[#allocation2 + $0x90] sm:$0xff]  ;;  %v3450_v8 = vsel %vm787_vm5, %v3311_v21, %v816_v25 }
 0x11e   : > { %4099 = vst [vmem:[#allocation5_spill] sm:$0xff] %v3442_v41  ;;  %2710 = vmatpush3.msra.mxu1 %v2444_v50  ;;  %v3461_v50 = vsel %vm698_vm6, %v3387_v42, %v1655_v53  ;;  %v3480_v25 = vsel %vm698_vm6, %v3331_v39, %v732_v6  ;;  %v821_v53 = vrot.slane %v670_v59, 2  ;;  %v1083_v6 = vrot.slane %v3442_v41, 2 }
 0x11f   : > { %1024 = vrot.lane.b32.xlu1 %v989_v19, %s2974_s12  ;;  %1022 = vrot.lane.b32.xlu0 %v3308_v20, %s2974_s12  ;;  %v3390_v19 = vrot.slane %v3354_v0, 2  ;;  %4100 = vst [vmem:[#allocation6_spill] sm:$0xff] %v3461_v50  ;;  %4102 = vst [vmem:[#allocation8_spill] sm:$0xff] %v3480_v25  ;;  %v942_v0 = vld [vmem:[#allocation2 + $0xb8] sm:$0x3] }
 0x120   : > { %2711 = vmatprep.subr.mxu1 %v2443_v51 }
 0x121   : > { %2712 = vmatpush3.msra.mxu1 %v2443_v51  ;;  %v3498_v51 = vsel %vm787_vm5, %v3341_v47, %v821_v53  ;;  %v3510_v53 = vld [vmem:[#allocation2 + $0xa8] sm:$0xff] }
 0x122   : > { %2713 = vmatprep.subr.mxu1 %v2442_v63  ;;  %4104 = vst [vmem:[#allocation10_spill] sm:$0xff] %v3498_v51  ;;  %4105 = vst [vmem:[#allocation11_spill] sm:$0xff] %v3510_v53  ;;  %v1000_v25 = vrot.slane %v3510_v53, 1 }
 0x123   : > { %1112 = vrot.lane.b32.xlu1 %v3315_v26, %s2973_s24  ;;  %1110 = vrot.lane.b32.xlu0 %v3319_v28, %s2973_s24  ;;  %v3428_v26 = vsel %vm698_vm6, %v3276_v4, %v722_v61  ;;  %v3446_v4 = vsel %vm698_vm6, %v3286_v11, %v727_v14  ;;  %v1743_v61 = vrot.slane %v1596_v13, 2  ;;  %v998_v11 = vrot.slane %v939_v24, 1 }
 0x124   : > { %v1082_v13 = vsel %vm787_vm5, %v3311_v21, %v1081_v29  ;;  %v995_v14 = vrot.slane %v3442_v41, 1  ;;  %v2441_v29 = vld [vmem:[%s4080_s3 + $0x60] sm:$0xff]  ;;  %2714 = vmatpush3.msra.mxu1 %v2442_v63  ;;  %v1086_v63 = vrot.slane %v939_v24, 2 }
 0x125   : > { %v3465_v9 = vsel %vm787_vm5, %v3390_v19, %v1743_v61  ;;  %v999_v59 = vsel %vm698_vm6, %v3331_v39, %v998_v11  ;;  %2715 = vmatprep.subr.mxu1 %v2441_v29  ;;  %v1660_v11 = vrot.slane %v1599_v1, 1 }
 0x126   : > { %4101 = vst [vmem:[#allocation7_spill] sm:$0xff] %v3465_v9  ;;  %v3504_v61 = vsel %vm698_vm6, %v995_v14, %v3331_v39  ;;  %2716 = vmatpush3.msra.mxu1 %v2441_v29  ;;  %v917_v39 = vld [vmem:[%s4080_s3 + $0x40] sm:$0xff]  ;;  %v1087_v14 = vsel %vm787_vm5, %v3341_v47, %v1086_v63  ;;  %v3526_v29 = vsel %vm787_vm5, %v1083_v6, %v3341_v47  ;;  %v915_v47 = vld [vmem:[%s4080_s3 + $0x30] sm:$0xff] }
 0x127   : > { %1028 = vrot.lane.b32.xlu1 %v3328_v38, %s2974_s12  ;;  %1026 = vrot.lane.b32.xlu0 %v3338_v45, %s2974_s12  ;;  %v3475_v38 = vsel %vm787_vm5, %v1078_v30, %v3311_v21  ;;  %v3488_v21 = vld [vmem:[#allocation2 + $0xc8] sm:$0xff]  ;;  %v919_v30 = vld [vmem:[%s4080_s3 + $0x50] sm:$0xff]  ;;  %v3547_v6 = vsel %vm698_vm6, %v1000_v25, %v3387_v42  ;;  %v3551_v9 = vld [vmem:[#allocation2 + $0xc0] sm:$0xff] }
 0x128   : > { %4103 = vst [vmem:[#allocation9_spill] sm:$0xff] %v3488_v21  ;;  %2743 = vmatprep.subr.mxu0 %v919_v30  ;;  %v1006_v51 = vrot.slane %v3488_v21, 1  ;;  %4107 = vst [vmem:[#allocation13_spill] sm:$0xff] %v3547_v6  ;;  %v1094_v41 = vrot.slane %v3488_v21, 2  ;;  %v914_v25 = vld [vmem:[%s4080_s3 + $0x28] sm:$0xff] }
 0x129   : > { %2744 = vmatpush3.msra.mxu0 %v919_v30  ;;  %v1003_v30 = vrot.slane %v942_v0, 1 }
 0x12a   : > { %v3520_v24 = vsel %vm698_vm6, %v1006_v51, %v1660_v11  ;;  %v3535_v11 = vld [vmem:[%s4080_s3 + $0x118] sm:$0xff] }
 0x12b   : > { %1116 = vrot.lane.b32.xlu1 %v1082_v13, %s2973_s24  ;;  %1114 = vrot.lane.b32.xlu0 %v3475_v38, %s2973_s24  ;;  %v918_v13 = vld [vmem:[%s4080_s3 + $0x48] sm:$0xff]  ;;  %4106 = vst [vmem:[#allocation12_spill] sm:$0xff] %v3520_v24  ;;  %v1004_v63 = vsel %vm698_vm6, %v3387_v42, %v1003_v30  ;;  %v945_v24 = vld [vmem:[#allocation2 + $0xd0] sm:$0x3] }
 0x12c   : > { %2745 = vmatprep.subr.mxu0 %v918_v13  ;;  %2789 = vmatprep.subr.mxu1 %v3535_v11  ;;  %v1008_v21 = vrot.slane %v945_v24, 1 }
 0x12d   : > { %2746 = vmatpush3.msra.mxu0 %v918_v13  ;;  %v1091_v13 = vrot.slane %v942_v0, 2  ;;  %v3561_v0 = vsel %vm787_vm5, %v1094_v41, %v1748_v16  ;;  %v913_v16 = vld [vmem:[%s4080_s3 + $0x20] sm:$0xff] }
 0x12e   : > { %2747 = vmatprep.subr.mxu0 %v917_v39  ;;  %4108 = vst [vmem:[#allocation14_spill] sm:$0xff] %v3561_v0  ;;  %v911_v0 = vld [vmem:[%s4080_s3 + $0x10] sm:$0xff] }
 0x12f   : > { %1032 = vrot.lane.b32.xlu1 %v999_v59, %s2974_s12  ;;  %1030 = vrot.lane.b32.xlu0 %v3504_v61, %s2974_s12  ;;  %v916_v59 = vld [vmem:[%s4080_s3 + $0x38] sm:$0xff]  ;;  %v1092_v1 = vsel %vm787_vm5, %v3390_v19, %v1091_v13 }
 0x130   : > { %2748 = vmatpush3.msra.mxu0 %v917_v39  ;;  %v1088_v39 = vrot.slane %v3510_v53, 2  ;;  %v3574_v53 = vld [vmem:[#allocation2] sm:$0xff] }
 0x131   : > { %2749 = vmatprep.subr.mxu0 %v916_v59 }
 0x132   : > { %2750 = vmatpush3.msra.mxu0 %v916_v59  ;;  %v3571_v59 = vsel %vm787_vm5, %v1088_v39, %v3390_v19  ;;  %v1009_v39 = vsel %vm698_vm6, %v1006_v51, %v1008_v21 }
 0x133   : > { %1120 = vrot.lane.b32.xlu1 %v1087_v14, %s2973_s24  ;;  %1118 = vrot.lane.b32.xlu0 %v3526_v29, %s2973_s24  ;;  %v673_v14 = vld [vmem:[#allocation2 + $0xb8] sm:$0x3] }
 0x134   : > { %v737_v50 = vrot.slane %v673_v14, 1  ;;  %2751 = vmatprep.subr.mxu0 %v915_v47 }
 0x135   : > { %2752 = vmatpush3.msra.mxu0 %v915_v47  ;;  %v912_v47 = vld [vmem:[%s4080_s3 + $0x18] sm:$0xff] }
 0x136   : > { %v3565_v30 = vsel %vm698_vm6, %v3387_v42, %v737_v50  ;;  %2753 = vmatprep.subr.mxu0 %v914_v25  ;;  %v826_v42 = vrot.slane %v673_v14, 2  ;;  %v1093_v50 = vrot.slane %v3551_v9, 2 }
 0x137   : > { %1036 = vrot.lane.b32.xlu1 %v1004_v63, %s2974_s12  ;;  %1034 = vrot.lane.b32.xlu0 %v3547_v6, %s2974_s12  ;;  %4109 = vst [vmem:[#allocation15_spill] sm:$0xff] %v3565_v30  ;;  %v1005_v63 = vrot.slane %v3551_v9, 1  ;;  %v3576_v6 = vld [vmem:[#allocation2 + $0x8] sm:$0xff]  ;;  %v652_v30 = vld [vmem:[#allocation2 + $0x10] sm:$0x3] }
 0x138   : > { %2754 = vmatpush3.msra.mxu0 %v914_v25  ;;  %v3590_v13 = vsel %vm787_vm5, %v3390_v19, %v826_v42  ;;  %v699_v25 = vrot.slane %v3574_v53, 1  ;;  %v3605_v19 = vsel %vm787_vm5, %v1093_v50, %v1094_v41  ;;  %v788_v42 = vrot.slane %v3574_v53, 2  ;;  %v909_v50 = vld [vmem:[%s4080_s3] sm:$0xff] }
 0x139   : > { %v3594_v14 = vsel %vm698_vm6, %v1005_v63, %v1006_v51  ;;  %2755 = vmatprep.subr.mxu0 %v913_v16  ;;  %v1096_v51 = vrot.slane %v945_v24, 2  ;;  %v702_v63 = vrot.slane %v652_v30, 1 }
 0x13a   : > { %2756 = vmatpush3.msra.mxu0 %v913_v16  ;;  %v910_v16 = vld [vmem:[%s4080_s3 + $0x8] sm:$0xff] }
 0x13b   : > { %1124 = vrot.lane.b32.xlu1 %v1092_v1, %s2973_s24  ;;  %1122 = vrot.lane.b32.xlu0 %v3571_v59, %s2973_s24  ;;  %v700_v1 = vrot.slane %v3576_v6, 1  ;;  %v1097_v24 = vsel %vm787_vm5, %v1094_v41, %v1096_v51 }
 0x13c   : > { %2757 = vmatprep.subr.mxu0 %v912_v47 }
 0x13d   : > { %v701_v21 = vsel %vm698_vm6, %v699_v25, %v700_v1  ;;  %2758 = vmatpush3.msra.mxu0 %v912_v47  ;;  %v703_v47 = vsel %vm698_vm6, %v700_v1, %v702_v63  ;;  %v791_v25 = vrot.slane %v652_v30, 2  ;;  %v2491_v30 = vld [vmem:[%s4080_s3 + $0xf0] sm:$0xff] }
 0x13e   : > { %2759 = vmatprep.subr.mxu0 %v911_v0 }
 0x13f   : > { %1040 = vrot.lane.b32.xlu1 %v1009_v39, %s2974_s12  ;;  %1038 = vrot.lane.b32.xlu0 %v3594_v14, %s2974_s12  ;;  %v789_v39 = vrot.slane %v3576_v6, 2 }
 0x140   : > { %2760 = vmatpush3.msra.mxu0 %v911_v0 }
 0x141   : > { %2761 = vmatprep.subr.mxu0 %v910_v16  ;;  %v790_v0 = vsel %vm787_vm5, %v788_v42, %v789_v39 }
 0x142   : > { %2762 = vmatpush3.msra.mxu0 %v910_v16 }
 0x143   : > { %1126 = vrot.lane.b32.xlu0 %v3605_v19, %s2973_s24  ;;  %739 = vrot.lane.b32.xlu1 %v701_v21, %s2974_s12  ;;  %v792_v21 = vsel %vm787_vm5, %v789_v39, %v791_v25 }
 0x144   : > { %2763 = vmatprep.subr.mxu0 %v909_v50 }
 0x145   : > { %2764 = vmatpush3.msra.mxu0 %v909_v50 }
 0x147   : > { %1128 = vrot.lane.b32.xlu0 %v1097_v24, %s2973_s24  ;;  %741 = vrot.lane.b32.xlu1 %v703_v47, %s2974_s12  ;;  %v2488_v24 = vld [vmem:[%s4080_s3 + $0xd8] sm:$0xff] }
 0x14b   : > { %828 = vrot.lane.b32.xlu0 %v790_v0, %s2973_s24  ;;  %830 = vrot.lane.b32.xlu1 %v792_v21, %s2973_s24 }
 0x14f   : > { %1667 = vrot.lane.b32.xlu0 %v3222_v43, %s2974_s12  ;;  %1669 = vrot.lane.b32.xlu1 %v3348_v55, %s2974_s12 }
 0x153   : > { %1755 = vrot.lane.b32.xlu0 %v3245_v54, %s2973_s24  ;;  %743 = vrot.lane.b32.xlu1 %v3199_v35, %s2974_s12 }
 0x157   : > { %1757 = vrot.lane.b32.xlu0 %v3352_v57, %s2973_s24  ;;  %745 = vrot.lane.b32.xlu1 %v3358_v2, %s2974_s12 }
 0x15b   : > { %832 = vrot.lane.b32.xlu0 %v3195_v34, %s2973_s24  ;;  %834 = vrot.lane.b32.xlu1 %v3362_v5, %s2973_s24 }
 0x15f   : > { %1671 = vrot.lane.b32.xlu0 %v3273_v3, %s2974_s12  ;;  %1673 = vrot.lane.b32.xlu1 %v3366_v10, %s2974_s12 }
 0x163   : > { %1759 = vrot.lane.b32.xlu0 %v3302_v18, %s2973_s24  ;;  %747 = vrot.lane.b32.xlu1 %v3222_v43, %s2974_s12 }
 0x167   : > { %1761 = vrot.lane.b32.xlu0 %v3370_v12, %s2973_s24  ;;  %749 = vrot.lane.b32.xlu1 %v3380_v15, %s2974_s12  ;;  %v2494_v12 = vld [vmem:[%s4080_s3 + $0x108] sm:$0xff] }
 0x16b   : > { %836 = vrot.lane.b32.xlu0 %v3245_v54, %s2973_s24  ;;  %838 = vrot.lane.b32.xlu1 %v3384_v17, %s2973_s24 }
 0x16f   : > { %1675 = vrot.lane.b32.xlu0 %v3308_v20, %s2974_s12  ;;  %1677 = vrot.lane.b32.xlu1 %v3394_v44, %s2974_s12 }
 0x173   : > { %1763 = vrot.lane.b32.xlu0 %v3319_v28, %s2973_s24  ;;  %751 = vrot.lane.b32.xlu1 %v3273_v3, %s2974_s12 }
 0x177   : > { %1765 = vrot.lane.b32.xlu0 %v3398_v36, %s2973_s24  ;;  %753 = vrot.lane.b32.xlu1 %v3402_v49, %s2974_s12 }
 0x179   : > { %v1099_v34 = vpop.permute.xlu1 %1098  ;;  %v1011_v35 = vpop.permute.xlu0 %1010 }
 0x17a   : > { %v1146_v43 = vsel %vm591_vm2, %v3177_v22, %v1011_v35 }
 0x17b   : > { %840 = vrot.lane.b32.xlu0 %v3302_v18, %s2973_s24  ;;  %842 = vrot.lane.b32.xlu1 %v3409_v52, %s2973_s24  ;;  %v1162_v54 = vsel %vm892_vm7, %v1146_v43, %v1099_v34  ;;  %v2495_v18 = vld [vmem:[%s4080_s3 + $0x110] sm:$0xff] }
 0x17c   : > { %2717 = vmatprep.mubr.msk.f32.mxu1 %vm1191_vm8, %v1162_v54  ;;  %v2487_v34 = vld [vmem:[%s4080_s3 + $0xd0] sm:$0xff]  ;;  %v2485_v54 = vld [vmem:[%s4080_s3 + $0xc0] sm:$0xff] }
 0x17d   : > { %v1101_v3 = vpop.permute.xlu1 %1100  ;;  %v1013_v55 = vpop.permute.xlu0 %1012 }
 0x17e   : > { %v1147_v57 = vsel %vm591_vm2, %v3179_v23, %v1013_v55 }
 0x17f   : > { %v1163_v2 = vsel %vm892_vm7, %v1147_v57, %v1101_v3  ;;  %1679 = vrot.lane.b32.xlu0 %v3338_v45, %s2974_s12  ;;  %1681 = vrot.lane.b32.xlu1 %v3420_v62, %s2974_s12  ;;  %v2493_v62 = vld [vmem:[%s4080_s3 + $0x100] sm:$0xff] }
 0x180   : > { %2718 = vmatmul.mubr.msk.f32.vlgmr.msra.gmra.mxu1 %vm1191_vm8, %v1163_v2 }
 0x181   : > { %v1017_v5 = vpop.permute.xlu1 %1016  ;;  %v1015_v10 = vpop.permute.xlu0 %1014  ;;  %2790 = vmatpush3.msra.mxu1 %v3535_v11 }
 0x182   : > { %2791 = vmatprep.subr.mxu1 %v2495_v18  ;;  %v1149_v15 = vsel %vm591_vm2, %v3189_v31, %v1017_v5  ;;  %v1148_v17 = vsel %vm591_vm2, %v3191_v33, %v1015_v10  ;;  %v4112_v5 = vld [vmem:[#allocation3_spill] sm:$0xff] }
 0x183   : > { %1767 = vrot.lane.b32.xlu0 %v3475_v38, %s2973_s24  ;;  %755 = vrot.lane.b32.xlu1 %v3308_v20, %s2974_s12  ;;  %v2492_v20 = vld [vmem:[%s4080_s3 + $0xf8] sm:$0xff] }
 0x184   : > { %2792 = vmatpush3.msra.mxu1 %v2495_v18 }
 0x185   : > { %v1105_v44 = vpop.permute.xlu1 %1104  ;;  %v1103_v36 = vpop.permute.xlu0 %1102  ;;  %2793 = vmatprep.subr.mxu1 %v2494_v12 }
 0x186   : > { %v1165_v49 = vsel %vm892_vm7, %v1149_v15, %v1105_v44  ;;  %v1164_v52 = vsel %vm892_vm7, %v1148_v17, %v1103_v36  ;;  %2794 = vmatpush3.msra.mxu1 %v2494_v12  ;;  %v4113_v12 = vld [vmem:[#allocation5_spill] sm:$0xff] }
 0x187   : > { %2720 = vmatprep.mubr.msk.f32.mxu1 %vm1191_vm8, %v1164_v52  ;;  %1769 = vrot.lane.b32.xlu0 %v3424_v27, %s2973_s24  ;;  %v4114_v52 = vld [vmem:[#allocation7_spill] sm:$0xff] }
 0x188   : > { %757 = vrot.lane.b32.xlu1 %v3428_v26, %s2974_s12  ;;  %2721 = vmatmul.mubr.msk.f32.gmra.mxu1 %vm1191_vm8, %v1165_v49 }
 0x189   : > { %v1021_v41 = vpop.permute.xlu1 %1020  ;;  %v1019_v11 = vpop.permute.xlu0 %1018  ;;  %2795 = vmatprep.subr.mxu1 %v2493_v62 }
 0x18a   : > { %2796 = vmatpush3.msra.mxu1 %v2493_v62  ;;  %v1151_v27 = vsel %vm591_vm2, %v3225_v46, %v1021_v41  ;;  %v1150_v26 = vsel %vm591_vm2, %v3227_v48, %v1019_v11  ;;  %v4115_v62 = vld [vmem:[#allocation8_spill] sm:$0xff]  ;;  %v4116_v41 = vld [vmem:[#allocation10_spill] sm:$0xff] }
 0x18b   : > { %844 = vrot.lane.b32.xlu0 %v3319_v28, %s2973_s24  ;;  %2797 = vmatprep.subr.mxu1 %v2492_v20  ;;  %v2490_v28 = vld [vmem:[%s4080_s3 + $0xe8] sm:$0xff]  ;;  %v4117_v11 = vld [vmem:[#allocation4_spill] sm:$0xff] }
 0x18c   : > { %846 = vrot.lane.b32.xlu1 %v3432_v32, %s2973_s24  ;;  %2798 = vmatpush3.msra.mxu1 %v2492_v20  ;;  %v2489_v32 = vld [vmem:[%s4080_s3 + $0xe0] sm:$0xff] }
 0x18d   : > { %v1109_v1 = vpop.permute.xlu1 %1108  ;;  %v1107_v51 = vpop.permute.xlu0 %1106  ;;  %2799 = vmatprep.subr.mxu1 %v2491_v30 }
 0x18e   : > { %v1167_v63 = vsel %vm892_vm7, %v1151_v27, %v1109_v1  ;;  %v1166_v16 = vsel %vm892_vm7, %v1150_v26, %v1107_v51  ;;  %2800 = vmatpush3.msra.mxu1 %v2491_v30  ;;  %v4118_v27 = vld [vmem:[#allocation11_spill] sm:$0xff] }
 0x18f   : > { %2723 = vmatprep.mubr.msk.f32.mxu1 %vm1191_vm8, %v1166_v16  ;;  %1683 = vrot.lane.b32.xlu0 %v3504_v61, %s2974_s12 }
 0x190   : > { %1685 = vrot.lane.b32.xlu1 %v3436_v37, %s2974_s12  ;;  %2724 = vmatmul.mubr.msk.f32.gmra.mxu1 %vm1191_vm8, %v1167_v63 }
 0x191   : > { %v1025_v42 = vpop.permute.xlu1 %1024  ;;  %v1023_v50 = vpop.permute.xlu0 %1022  ;;  %2801 = vmatprep.subr.mxu1 %v2490_v28 }
 0x192   : > { %2802 = vmatpush3.msra.mxu1 %v2490_v28  ;;  %v1153_v37 = vsel %vm591_vm2, %v3248_v56, %v1025_v42  ;;  %v1152_v47 = vsel %vm591_vm2, %v3250_v58, %v1023_v50 }
 0x193   : > { %1771 = vrot.lane.b32.xlu0 %v3526_v29, %s2973_s24  ;;  %2803 = vmatprep.subr.mxu1 %v2489_v32 }
 0x194   : > { %759 = vrot.lane.b32.xlu1 %v3338_v45, %s2974_s12  ;;  %2804 = vmatpush3.msra.mxu1 %v2489_v32  ;;  %v2486_v45 = vld [vmem:[%s4080_s3 + $0xc8] sm:$0xff] }
 0x195   : > { %v1113_v39 = vpop.permute.xlu1 %1112  ;;  %v1111_v25 = vpop.permute.xlu0 %1110  ;;  %2805 = vmatprep.subr.mxu1 %v2488_v24 }
 0x196   : > { %v1169_v0 = vsel %vm892_vm7, %v1153_v37, %v1113_v39  ;;  %v1168_v21 = vsel %vm892_vm7, %v1152_v47, %v1111_v25  ;;  %2806 = vmatpush3.msra.mxu1 %v2488_v24  ;;  %v3823_v37 = vld [vmem:[#allocation2 + $0xd8] sm:$0xff]  ;;  %v1602_v39 = vld [vmem:[#allocation2 + $0xe8] sm:$0x3] }
 0x197   : > { %2726 = vmatprep.mubr.msk.f32.mxu1 %vm1191_vm8, %v1168_v21  ;;  %1773 = vrot.lane.b32.xlu0 %v3440_v40, %s2973_s24  ;;  %v4120_v25 = vld [vmem:[#allocation14_spill] sm:$0xff] }
 0x198   : > { %761 = vrot.lane.b32.xlu1 %v3446_v4, %s2974_s12  ;;  %2727 = vmatmul.mubr.msk.f32.gmra.mxu1 %vm1191_vm8, %v1169_v0  ;;  %v1662_v0 = vrot.slane %v3823_v37, 1 }
 0x199   : > { %v1029_v35 = vpop.permute.xlu1 %1028  ;;  %v1027_v43 = vpop.permute.xlu0 %1026  ;;  %2807 = vmatprep.subr.mxu1 %v2487_v34 }
 0x19a   : > { %2808 = vmatpush3.msra.mxu1 %v2487_v34  ;;  %v1155_v40 = vsel %vm591_vm2, %v3255_v60, %v1029_v35  ;;  %v1154_v4 = vsel %vm591_vm2, %v3279_v7, %v1027_v43  ;;  %v4122_v34 = vld [vmem:[#allocation9_spill] sm:$0xff] }
 0x19b   : > { %848 = vrot.lane.b32.xlu0 %v3475_v38, %s2973_s24  ;;  %2809 = vmatprep.subr.mxu1 %v2486_v45  ;;  %v4110_v38 = vld [vmem:[#allocation13_spill] sm:$0xff] }
 0x19c   : > { %850 = vrot.lane.b32.xlu1 %v3450_v8, %s2973_s24  ;;  %2810 = vmatpush3.msra.mxu1 %v2486_v45  ;;  %v4111_v8 = vld [vmem:[#allocation6_spill] sm:$0xff] }
 0x19d   : > { %v1117_v3 = vpop.permute.xlu1 %1116  ;;  %v1115_v55 = vpop.permute.xlu0 %1114  ;;  %2811 = vmatprep.subr.mxu1 %v2485_v54 }
 0x19e   : > { %v1171_v57 = vsel %vm892_vm7, %v1155_v40, %v1117_v3  ;;  %v1170_v2 = vsel %vm892_vm7, %v1154_v4, %v1115_v55  ;;  %2812 = vmatpush3.msra.mxu1 %v2485_v54  ;;  %v1665_v54 = vrot.slane %v1602_v39, 1  ;;  %v1750_v3 = vrot.slane %v3823_v37, 2 }
 0x19f   : > { %2729 = vmatprep.mubr.msk.f32.mxu1 %vm1191_vm8, %v1170_v2  ;;  %1687 = vrot.lane.b32.xlu0 %v4110_v38, %s2974_s12 }
 0x1a0   : > { %1689 = vrot.lane.b32.xlu1 %v4111_v8, %s2974_s12  ;;  %2730 = vmatmul.mubr.msk.f32.gmra.mxu1 %vm1191_vm8, %v1171_v57 }
 0x1a1   : > { %v1033_v60 = vpop.permute.xlu1 %1032  ;;  %v1031_v18 = vpop.permute.xlu0 %1030 }
 0x1a2   : > { %v1157_v10 = vsel %vm591_vm2, %v4112_v5, %v1033_v60  ;;  %v1156_v15 = vsel %vm591_vm2, %v4113_v12, %v1031_v18 }
 0x1a3   : > { %1775 = vrot.lane.b32.xlu0 %v3571_v59, %s2973_s24 }
 0x1a4   : > { %763 = vrot.lane.b32.xlu1 %v3504_v61, %s2974_s12 }
 0x1a5   : > { %v1121_v17 = vpop.permute.xlu1 %1120  ;;  %v1119_v44 = vpop.permute.xlu0 %1118 }
 0x1a6   : > { %v1173_v36 = vsel %vm892_vm7, %v1157_v10, %v1121_v17  ;;  %v1172_v49 = vsel %vm892_vm7, %v1156_v15, %v1119_v44 }
 0x1a7   : > { %2732 = vmatprep.mubr.msk.f32.mxu1 %vm1191_vm8, %v1172_v49  ;;  %1777 = vrot.lane.b32.xlu0 %v4114_v52, %s2973_s24 }
 0x1a8   : > { %765 = vrot.lane.b32.xlu1 %v4115_v62, %s2974_s12  ;;  %2733 = vmatmul.mubr.msk.f32.gmra.mxu1 %vm1191_vm8, %v1173_v36 }
 0x1a9   : > { %v1037_v61 = vpop.permute.xlu1 %1036  ;;  %v1035_v20 = vpop.permute.xlu0 %1034 }
 0x1aa   : > { %v1159_v30 = vsel %vm591_vm2, %v4117_v11, %v1037_v61  ;;  %v1158_v26 = vsel %vm591_vm2, %v4118_v27, %v1035_v20 }
 0x1ab   : > { %852 = vrot.lane.b32.xlu0 %v3526_v29, %s2973_s24  ;;  %v4119_v29 = vld [vmem:[#allocation12_spill] sm:$0xff] }
 0x1ac   : > { %854 = vrot.lane.b32.xlu1 %v4116_v41, %s2973_s24 }
 0x1ad   : > { %v1125_v1 = vpop.permute.xlu1 %1124  ;;  %v1123_v51 = vpop.permute.xlu0 %1122 }
 0x1ae   : > { %v1175_v63 = vsel %vm892_vm7, %v1159_v30, %v1125_v1  ;;  %v1174_v16 = vsel %vm892_vm7, %v1158_v26, %v1123_v51 }
 0x1af   : > { %2735 = vmatprep.mubr.msk.f32.mxu1 %vm1191_vm8, %v1174_v16  ;;  %1691 = vrot.lane.b32.xlu0 %v3594_v14, %s2974_s12  ;;  %v3825_v14 = vld [vmem:[#allocation2 + $0xe0] sm:$0xff] }
 0x1b0   : > { %1693 = vrot.lane.b32.xlu1 %v4119_v29, %s2974_s12  ;;  %2736 = vmatmul.mubr.msk.f32.gmra.mxu1 %vm1191_vm8, %v1175_v63  ;;  %v1663_v21 = vrot.slane %v3825_v14, 1  ;;  %v1751_v55 = vrot.slane %v3825_v14, 2 }
 0x1b1   : > { %v1041_v28 = vpop.permute.xlu1 %1040  ;;  %v1039_v32 = vpop.permute.xlu0 %1038 }
 0x1b2   : > { %v1160_v42 = vsel %vm591_vm2, %v3551_v9, %v1039_v32  ;;  %v1161_v45 = vsel %vm591_vm2, %v4122_v34, %v1041_v28  ;;  %v1664_v4 = vsel %vm698_vm6, %v1662_v0, %v1663_v21  ;;  %v1666_v60 = vsel %vm698_vm6, %v1663_v21, %v1665_v54 }
 0x1b3   : > { %1779 = vrot.lane.b32.xlu0 %v3605_v19, %s2973_s24  ;;  %v4121_v19 = vld [vmem:[#allocation15_spill] sm:$0xff] }
 0x1b4   : > { %767 = vrot.lane.b32.xlu1 %v4110_v38, %s2974_s12 }
 0x1b5   : > { %v1127_v50 = vpop.permute.xlu0 %1126  ;;  %v740_v24 = vpop.permute.xlu1 %739 }
 0x1b6   : > { %v1176_v47 = vsel %vm892_vm7, %v1160_v42, %v1127_v50  ;;  %v876_v57 = vsel %vm591_vm2, %v3574_v53, %v740_v24  ;;  %v1752_v53 = vsel %vm787_vm5, %v1750_v3, %v1751_v55  ;;  %v2920_v24 = vld [vmem:[#allocation2 + $0x30] sm:$0xff] }
 0x1b7   : > { %2738 = vmatprep.mubr.msk.f32.mxu1 %vm1191_vm8, %v1176_v47  ;;  %1781 = vrot.lane.b32.xlu0 %v4120_v25, %s2973_s24 }
 0x1b8   : > { %769 = vrot.lane.b32.xlu1 %v4121_v19, %s2974_s12 }
 0x1b9   : > { %v1129_v35 = vpop.permute.xlu0 %1128  ;;  %v742_v43 = vpop.permute.xlu1 %741 }
 0x1ba   : > { %v1177_v40 = vsel %vm892_vm7, %v1161_v45, %v1129_v35  ;;  %v877_v2 = vsel %vm591_vm2, %v3576_v6, %v742_v43 }
 0x1bb   : > { %2739 = vmatmul.mubr.msk.f32.gmra.mxu1 %vm1191_vm8, %v1177_v40  ;;  %856 = vrot.lane.b32.xlu0 %v3571_v59, %s2973_s24  ;;  %v1753_v59 = vrot.slane %v1602_v39, 2  ;;  %v2921_v39 = vld [vmem:[#allocation2 + $0x38] sm:$0xff] }
 0x1bc   : > { %858 = vrot.lane.b32.xlu1 %v3590_v13, %s2973_s24 }
 0x1bd   : > { %v829_v38 = vpop.permute.xlu0 %828  ;;  %v831_v8 = vpop.permute.xlu1 %830  ;;  %v1754_v15 = vsel %vm787_vm5, %v1751_v55, %v1753_v59 }
 0x1be   : > { %v894_v18 = vsel %vm892_vm7, %v877_v2, %v831_v8  ;;  %v893_v13 = vsel %vm892_vm7, %v876_v57, %v829_v38  ;;  %v2922_v2 = vld [vmem:[#allocation2 + $0x48] sm:$0xff]  ;;  %v2923_v8 = vld [vmem:[#allocation2 + $0x50] sm:$0xff] }
 0x1bf   : > { %1695 = vrot.lane.b32.xlu0 %v1664_v4, %s2974_s12  ;;  %2765 = vmatprep.mubr.msk.f32.mxu0 %vm1191_vm8, %v893_v13 }
 0x1c0   : > { %1697 = vrot.lane.b32.xlu1 %v1666_v60, %s2974_s12  ;;  %2766 = vmatmul.mubr.msk.f32.vlgmr.msra.gmra.mxu0 %vm1191_vm8, %v894_v18 }
 0x1c1   : > { %v1668_v6 = vpop.permute.xlu0 %1667  ;;  %v1670_v10 = vpop.permute.xlu1 %1669 }
 0x1c2   : > { %v1803_v17 = vsel %vm591_vm2, %v3191_v33, %v1668_v6  ;;  %v1804_v52 = vsel %vm591_vm2, %v3189_v31, %v1670_v10 }
 0x1c3   : > { %1783 = vrot.lane.b32.xlu0 %v1752_v53, %s2973_s24 }
 0x1c4   : > { %1785 = vrot.lane.b32.xlu1 %v1754_v15, %s2973_s24 }
 0x1c5   : > { %v1756_v44 = vpop.permute.xlu0 %1755  ;;  %v744_v36 = vpop.permute.xlu1 %743 }
 0x1c6   : > { %v1819_v49 = vsel %vm892_vm7, %v1803_v17, %v1756_v44  ;;  %v878_v41 = vsel %vm591_vm2, %v3177_v22, %v744_v36  ;;  %v2924_v44 = vld [vmem:[#allocation2 + $0x80] sm:$0xff] }
 0x1c7   : > { %2813 = vmatprep.mubr.msk.f32.mxu1 %vm1191_vm8, %v1819_v49 }
 0x1c9   : > { %v1758_v62 = vpop.permute.xlu0 %1757  ;;  %v746_v61 = vpop.permute.xlu1 %745 }
 0x1ca   : > { %v1820_v20 = vsel %vm892_vm7, %v1804_v52, %v1758_v62  ;;  %v879_v33 = vsel %vm591_vm2, %v3179_v23, %v746_v61  ;;  %v2925_v61 = vld [vmem:[#allocation2 + $0x60] sm:$0xff] }
 0x1cb   : > { %2814 = vmatmul.mubr.msk.f32.vlgmr.msra.gmra.mxu1 %vm1191_vm8, %v1820_v20 }
 0x1cd   : > { %v833_v30 = vpop.permute.xlu0 %832  ;;  %v835_v26 = vpop.permute.xlu1 %834 }
 0x1ce   : > { %v895_v1 = vsel %vm892_vm7, %v878_v41, %v833_v30  ;;  %v896_v51 = vsel %vm892_vm7, %v879_v33, %v835_v26 }
 0x1cf   : > { %2768 = vmatprep.mubr.msk.f32.mxu0 %vm1191_vm8, %v895_v1 }
 0x1d0   : > { %2769 = vmatmul.mubr.msk.f32.gmra.mxu0 %vm1191_vm8, %v896_v51 }
 0x1d1   : > { %v1672_v31 = vpop.permute.xlu0 %1671  ;;  %v1674_v63 = vpop.permute.xlu1 %1673 }
 0x1d2   : > { %v1805_v16 = vsel %vm591_vm2, %v3227_v48, %v1672_v31  ;;  %v1806_v23 = vsel %vm591_vm2, %v3225_v46, %v1674_v63 }
 0x1d5   : > { %v1760_v29 = vpop.permute.xlu0 %1759  ;;  %v748_v22 = vpop.permute.xlu1 %747 }
 0x1d6   : > { %v1821_v28 = vsel %vm892_vm7, %v1805_v16, %v1760_v29  ;;  %v880_v47 = vsel %vm591_vm2, %v2920_v24, %v748_v22 }
 0x1d7   : > { %2816 = vmatprep.mubr.msk.f32.mxu1 %vm1191_vm8, %v1821_v28 }
 0x1d9   : > { %v1762_v32 = vpop.permute.xlu0 %1761  ;;  %v750_v42 = vpop.permute.xlu1 %749 }
 0x1da   : > { %v1822_v50 = vsel %vm892_vm7, %v1806_v23, %v1762_v32  ;;  %v881_v48 = vsel %vm591_vm2, %v2921_v39, %v750_v42  ;;  %v2099_v39 = vld [vmem:[%s4082_s5 + $0x18] sm:$0xff] }
 0x1db   : > { %2817 = vmatmul.mubr.msk.f32.gmra.mxu1 %vm1191_vm8, %v1822_v50  ;;  %v2927_v50 = vld [vmem:[#allocation2 + $0x78] sm:$0xff]  ;;  %2837 = vmatprep.subr.mxu0 %v2099_v39 }
 0x1dc   : > { %2838 = vmatpush3.msra.mxu0 %v2099_v39 }
 0x1dd   : > { %v837_v25 = vpop.permute.xlu0 %836  ;;  %v839_v19 = vpop.permute.xlu1 %838 }
 0x1de   : > { %v897_v0 = vsel %vm892_vm7, %v880_v47, %v837_v25  ;;  %v898_v21 = vsel %vm892_vm7, %v881_v48, %v839_v19 }
 0x1df   : > { %2771 = vmatprep.mubr.msk.f32.mxu0 %vm1191_vm8, %v897_v0  ;;  %v2098_v0 = vld [vmem:[%s4082_s5 + $0x10] sm:$0xff] }
 0x1e0   : > { %2772 = vmatmul.mubr.msk.f32.gmra.mxu0 %vm1191_vm8, %v898_v21  ;;  %2839 = vmatprep.subr.mxu0 %v2098_v0 }
 0x1e1   : > { %v1676_v46 = vpop.permute.xlu0 %1675  ;;  %v1678_v45 = vpop.permute.xlu1 %1677  ;;  %2840 = vmatpush3.msra.mxu0 %v2098_v0 }
 0x1e2   : > { %v1807_v35 = vsel %vm591_vm2, %v3250_v58, %v1676_v46  ;;  %v1808_v4 = vsel %vm591_vm2, %v3248_v56, %v1678_v45  ;;  %v2097_v46 = vld [vmem:[%s4082_s5 + $0x8] sm:$0xff] }
 0x1e3   : > { %2841 = vmatprep.subr.mxu0 %v2097_v46 }
 0x1e4   : > { %2842 = vmatpush3.msra.mxu0 %v2097_v46 }
 0x1e5   : > { %v1764_v43 = vpop.permute.xlu0 %1763  ;;  %v752_v54 = vpop.permute.xlu1 %751 }
 0x1e6   : > { %v1823_v40 = vsel %vm892_vm7, %v1807_v35, %v1764_v43  ;;  %v882_v38 = vsel %vm591_vm2, %v2922_v2, %v752_v54  ;;  %v2096_v35 = vld [vmem:[%s4082_s5] sm:$0xff] }
 0x1e7   : > { %2819 = vmatprep.mubr.msk.f32.mxu1 %vm1191_vm8, %v1823_v40  ;;  %2843 = vmatprep.subr.mxu0 %v2096_v35 }
 0x1e8   : > { %2844 = vmatpush3.msra.mxu0 %v2096_v35 }
 0x1e9   : > { %v1766_v3 = vpop.permute.xlu0 %1765  ;;  %v754_v55 = vpop.permute.xlu1 %753 }
 0x1ea   : > { %v1824_v57 = vsel %vm892_vm7, %v1808_v4, %v1766_v3  ;;  %v883_v58 = vsel %vm591_vm2, %v2923_v8, %v754_v55 }
 0x1eb   : > { %2820 = vmatmul.mubr.msk.f32.gmra.mxu1 %vm1191_vm8, %v1824_v57 }
 0x1ed   : > { %v841_v60 = vpop.permute.xlu0 %840  ;;  %v843_v59 = vpop.permute.xlu1 %842 }
 0x1ee   : > { %v899_v18 = vsel %vm892_vm7, %v882_v38, %v841_v60  ;;  %v900_v13 = vsel %vm892_vm7, %v883_v58, %v843_v59  ;;  %v2928_v58 = vld [vmem:[#allocation2 + $0x98] sm:$0xff] }
 0x1ef   : > { %2774 = vmatprep.mubr.msk.f32.mxu0 %vm1191_vm8, %v899_v18 }
 0x1f0   : > { %2775 = vmatmul.mubr.msk.f32.gmra.mxu0 %vm1191_vm8, %v900_v13 }
 0x1f1   : > { %v1680_v56 = vpop.permute.xlu0 %1679  ;;  %v1682_v53 = vpop.permute.xlu1 %1681 }
 0x1f2   : > { %v1809_v6 = vsel %vm591_vm2, %v3279_v7, %v1680_v56  ;;  %v1810_v36 = vsel %vm591_vm2, %v2924_v44, %v1682_v53  ;;  %v2926_v7 = vld [vmem:[#allocation2 + $0x68] sm:$0xff] }
 0x1f5   : > { %v1768_v10 = vpop.permute.xlu0 %1767  ;;  %v756_v15 = vpop.permute.xlu1 %755 }
 0x1f6   : > { %v1825_v17 = vsel %vm892_vm7, %v1809_v6, %v1768_v10  ;;  %v884_v20 = vsel %vm591_vm2, %v2925_v61, %v756_v15 }
 0x1f7   : > { %2822 = vmatprep.mubr.msk.f32.mxu1 %vm1191_vm8, %v1825_v17 }
 0x1f9   : > { %v1770_v49 = vpop.permute.xlu0 %1769 }
 0x1fa   : > { %v1826_v52 = vsel %vm892_vm7, %v1810_v36, %v1770_v49  ;;  %v758_v62 = vpop.permute.xlu1 %757 }
 0x1fb   : > { %2823 = vmatmul.mubr.msk.f32.gmra.mxu1 %vm1191_vm8, %v1826_v52  ;;  %v885_v33 = vsel %vm591_vm2, %v2926_v7, %v758_v62 }
 0x1fd   : > { %v845_v41 = vpop.permute.xlu0 %844 }
 0x1fe   : > { %v901_v30 = vsel %vm892_vm7, %v884_v20, %v845_v41  ;;  %v847_v26 = vpop.permute.xlu1 %846 }
 0x1ff   : > { %v902_v1 = vsel %vm892_vm7, %v885_v33, %v847_v26  ;;  %2777 = vmatprep.mubr.msk.f32.mxu0 %vm1191_vm8, %v901_v30 }
 0x200   : > { %2778 = vmatmul.mubr.msk.f32.gmra.mxu0 %vm1191_vm8, %v902_v1 }
 0x201   : > { %v1684_v51 = vpop.permute.xlu0 %1683 }
 0x202   : > { %v1686_v31 = vpop.permute.xlu1 %1685  ;;  %v1811_v63 = vsel %vm591_vm2, %v4113_v12, %v1684_v51 }
 0x203   : > { %v1812_v28 = vsel %vm591_vm2, %v4112_v5, %v1686_v31 }
 0x205   : > { %v1772_v16 = vpop.permute.xlu0 %1771 }
 0x206   : > { %v1827_v29 = vsel %vm892_vm7, %v1811_v63, %v1772_v16  ;;  %v760_v22 = vpop.permute.xlu1 %759 }
 0x207   : > { %2825 = vmatprep.mubr.msk.f32.mxu1 %vm1191_vm8, %v1827_v29  ;;  %v886_v24 = vsel %vm591_vm2, %v2927_v50, %v760_v22 }
 0x209   : > { %v1774_v23 = vpop.permute.xlu0 %1773 }
 0x20a   : > { %v1828_v32 = vsel %vm892_vm7, %v1812_v28, %v1774_v23  ;;  %v762_v42 = vpop.permute.xlu1 %761 }
 0x20b   : > { %2826 = vmatmul.mubr.msk.f32.gmra.mxu1 %vm1191_vm8, %v1828_v32  ;;  %v887_v48 = vsel %vm591_vm2, %v2924_v44, %v762_v42 }
 0x20d   : > { %v849_v47 = vpop.permute.xlu0 %848 }
 0x20e   : > { %v903_v25 = vsel %vm892_vm7, %v886_v24, %v849_v47  ;;  %v851_v19 = vpop.permute.xlu1 %850 }
 0x20f   : > { %v904_v5 = vsel %vm892_vm7, %v887_v48, %v851_v19  ;;  %2780 = vmatprep.mubr.msk.f32.mxu0 %vm1191_vm8, %v903_v25 }
 0x210   : > { %2781 = vmatmul.mubr.msk.f32.gmra.mxu0 %vm1191_vm8, %v904_v5 }
 0x211   : > { %v1688_v21 = vpop.permute.xlu0 %1687 }
 0x212   : > { %v1690_v45 = vpop.permute.xlu1 %1689  ;;  %v1813_v43 = vsel %vm591_vm2, %v4118_v27, %v1688_v21 }
 0x213   : > { %v1814_v3 = vsel %vm591_vm2, %v4117_v11, %v1690_v45  ;;  %v4001_v45 = vld [vmem:[%s4081_s4] ss:$0 sm:$0xff] }
 0x215   : > { %v1776_v54 = vpop.permute.xlu0 %1775 }
 0x216   : > { %v1829_v40 = vsel %vm892_vm7, %v1813_v43, %v1776_v54  ;;  %v764_v4 = vpop.permute.xlu1 %763 }
 0x217   : > { %2828 = vmatprep.mubr.msk.f32.mxu1 %vm1191_vm8, %v1829_v40  ;;  %v888_v38 = vsel %vm591_vm2, %v4113_v12, %v764_v4 }
 0x219   : > { %v1778_v55 = vpop.permute.xlu0 %1777 }
 0x21a   : > { %v1830_v57 = vsel %vm892_vm7, %v1814_v3, %v1778_v55  ;;  %v766_v2 = vpop.permute.xlu1 %765 }
 0x21b   : > { %2829 = vmatmul.mubr.msk.f32.gmra.mxu1 %vm1191_vm8, %v1830_v57  ;;  %v889_v60 = vsel %vm591_vm2, %v2928_v58, %v766_v2 }
 0x21d   : > { %v853_v8 = vpop.permute.xlu0 %852 }
 0x21e   : > { %v905_v59 = vsel %vm892_vm7, %v888_v38, %v853_v8  ;;  %v855_v18 = vpop.permute.xlu1 %854 }
 0x21f   : > { %v906_v13 = vsel %vm892_vm7, %v889_v60, %v855_v18  ;;  %2783 = vmatprep.mubr.msk.f32.mxu0 %vm1191_vm8, %v905_v59 }
 0x220   : > { %2784 = vmatmul.mubr.msk.f32.gmra.mxu0 %vm1191_vm8, %v906_v13 }
 0x221   : > { %v1692_v11 = vpop.permute.xlu0 %1691 }
 0x222   : > { %v1694_v56 = vpop.permute.xlu1 %1693  ;;  %v1815_v53 = vsel %vm591_vm2, %v3551_v9, %v1692_v11  ;;  %v2929_v9 = vld [vmem:[#allocation2 + $0xb0] sm:$0xff] }
 0x223   : > { %v1816_v15 = vsel %vm591_vm2, %v4122_v34, %v1694_v56 }
 0x225   : > { %v1780_v6 = vpop.permute.xlu0 %1779 }
 0x226   : > { %v1831_v12 = vsel %vm892_vm7, %v1815_v53, %v1780_v6  ;;  %v768_v10 = vpop.permute.xlu1 %767 }
 0x227   : > { %2831 = vmatprep.mubr.msk.f32.mxu1 %vm1191_vm8, %v1831_v12  ;;  %v890_v49 = vsel %vm591_vm2, %v4118_v27, %v768_v10 }
 0x229   : > { %v1782_v17 = vpop.permute.xlu0 %1781 }
 0x22a   : > { %v1832_v44 = vsel %vm892_vm7, %v1816_v15, %v1782_v17  ;;  %v770_v36 = vpop.permute.xlu1 %769 }
 0x22b   : > { %2832 = vmatmul.mubr.msk.f32.gmra.mxu1 %vm1191_vm8, %v1832_v44  ;;  %v891_v62 = vsel %vm591_vm2, %v2929_v9, %v770_v36 }
 0x22d   : > { %v857_v52 = vpop.permute.xlu0 %856 }
 0x22e   : > { %v907_v61 = vsel %vm892_vm7, %v890_v49, %v857_v52  ;;  %v859_v20 = vpop.permute.xlu1 %858 }
 0x22f   : > { %v908_v41 = vsel %vm892_vm7, %v891_v62, %v859_v20  ;;  %2786 = vmatprep.mubr.msk.f32.mxu0 %vm1191_vm8, %v907_v61 }
 0x230   : > { %2787 = vmatmul.mubr.msk.f32.gmra.mxu0 %vm1191_vm8, %v908_v41 }
 0x231   : > { %v1696_v34 = vpop.permute.xlu0 %1695 }
 0x232   : > { %v1698_v7 = vpop.permute.xlu1 %1697  ;;  %v1817_v33 = vsel %vm591_vm2, %v3823_v37, %v1696_v34 }
 0x233   : > { %v1818_v27 = vsel %vm591_vm2, %v3825_v14, %v1698_v7 }
 0x235   : > { %v1784_v30 = vpop.permute.xlu0 %1783 }
 0x236   : > { %v1833_v26 = vsel %vm892_vm7, %v1817_v33, %v1784_v30  ;;  %v1786_v1 = vpop.permute.xlu1 %1785 }
 0x237   : > { %v1834_v51 = vsel %vm892_vm7, %v1818_v27, %v1786_v1  ;;  %2834 = vmatprep.mubr.msk.f32.mxu1 %vm1191_vm8, %v1833_v26 }
 0x238   : > { %2835 = vmatmul.mubr.msk.f32.gmra.mxu1 %vm1191_vm8, %v1834_v51 }
 0x240   : > { %v2719_v31 = vpop.f32.mrf.mxu1 }
 0x242   : > { %v1306_v63 = vpop.f32.mrf.mxu1 }
 0x248   : > { %v2722_v16 = vpop.f32.mrf.mxu1 }
 0x24a   : > { %v1316_v29 = vpop.f32.mrf.mxu1 }
 0x250   : > { %v2725_v22 = vpop.f32.mrf.mxu1 }
 0x252   : > { %v1326_v28 = vpop.f32.mrf.mxu1 }
 0x258   : > { %v2728_v37 = vpop.f32.mrf.mxu1 }
 0x25a   : > { %v1336_v23 = vpop.f32.mrf.mxu1 }
 0x260   : > { %v3982_v32 = vpop.f32.mrf.mxu1 }
 0x262   : > { %v3984_v14 = vpop.f32.mrf.mxu1 }
 0x268   : > { %v3986_v42 = vpop.f32.mrf.mxu1 }
 0x26a   : > { %v3988_v50 = vpop.f32.mrf.mxu1 }
 0x270   : > { %v3990_v24 = vpop.f32.mrf.mxu1 }
 0x272   : > { %v3992_v47 = vpop.f32.mrf.mxu1 }
 0x27b   : > { %v3994_v39 = vpop.f32.mrf.mxu1 }
 0x27d   : > { %v3996_v25 = vpop.f32.mrf.mxu1 }
 0x280   : > { %v2767_v48 = vpop.f32.mrf.mxu0 }
 0x281   : > { %v1505_v5 = vadd.f32 %v2767_v48, %v2719_v31 }
 0x282   : > { %v1499_v19 = vpop.f32.mrf.mxu0 }
 0x283   : > { %v1500_v21 = vadd.f32 %v1499_v19, %v1306_v63 }
 0x28b   : > { %v2815_v0 = vpop.f32.mrf.mxu1 }
 0x28c   : > { %v2042_v46 = vadd.f32 %v2815_v0, %v1505_v5 }
 0x28d   : > { %v1962_v35 = vpop.f32.mrf.mxu1 }
 0x28e   : > { %v2041_v43 = vadd.f32 %v1962_v35, %v1500_v21  ;;  %v2065_v54 = vadd.f32 %v4001_v45, %v2042_v46 }
 0x290   : > { %v2064_v40 = vadd.f32 %v4001_v45, %v2041_v43  ;;  %v2081_v3 = vmax.f32 %v2065_v54, 0.0  ;;  %v2770_v55 = vpop.f32.mrf.mxu0 }
 0x291   : > { %v1515_v2 = vadd.f32 %v2770_v55, %v2722_v16 }
 0x292   : > { %v2080_v4 = vmax.f32 %v2064_v40, 0.0  ;;  %v1509_v57 = vpop.f32.mrf.mxu0 }
 0x293   : > { %v1510_v8 = vadd.f32 %v1509_v57, %v1316_v29 }
 0x294   : > { %2845 = vmatprep.mubr.msk.f32.mxu0 %vm591_vm2, %v2080_v4 }
 0x295   : > { %2846 = vmatmul.mubr.msk.f32.vlgmr.msra.gmra.mxu0 %vm591_vm2, %v2081_v3 }
 0x29b   : > { %v2818_v38 = vpop.f32.mrf.mxu1 }
 0x29c   : > { %v2044_v58 = vadd.f32 %v2818_v38, %v1515_v2 }
 0x29d   : > { %v1972_v60 = vpop.f32.mrf.mxu1 }
 0x29e   : > { %v2043_v59 = vadd.f32 %v1972_v60, %v1510_v8  ;;  %v2067_v18 = vadd.f32 %v4001_v45, %v2044_v58 }
 0x2a0   : > { %v2066_v13 = vadd.f32 %v4001_v45, %v2043_v59  ;;  %v2083_v56 = vmax.f32 %v2067_v18, 0.0  ;;  %v2773_v53 = vpop.f32.mrf.mxu0 }
 0x2a1   : > { %v1525_v12 = vadd.f32 %v2773_v53, %v2725_v22 }
 0x2a2   : > { %v2082_v11 = vmax.f32 %v2066_v13, 0.0  ;;  %v1519_v6 = vpop.f32.mrf.mxu0 }
 0x2a3   : > { %v1520_v15 = vadd.f32 %v1519_v6, %v1326_v28 }
 0x2a4   : > { %2848 = vmatprep.mubr.msk.f32.mxu0 %vm591_vm2, %v2082_v11 }
 0x2a5   : > { %2849 = vmatmul.mubr.msk.f32.gmra.mxu0 %vm591_vm2, %v2083_v56 }
 0x2ab   : > { %v2821_v10 = vpop.f32.mrf.mxu1 }
 0x2ac   : > { %v2046_v17 = vadd.f32 %v2821_v10, %v1525_v12 }
 0x2ad   : > { %v1982_v44 = vpop.f32.mrf.mxu1 }
 0x2ae   : > { %v2045_v36 = vadd.f32 %v1982_v44, %v1520_v15  ;;  %v2069_v49 = vadd.f32 %v4001_v45, %v2046_v17 }
 0x2b0   : > { %v2068_v52 = vadd.f32 %v4001_v45, %v2045_v36  ;;  %v2085_v62 = vmax.f32 %v2069_v49, 0.0  ;;  %v2776_v61 = vpop.f32.mrf.mxu0 }
 0x2b1   : > { %v1535_v41 = vadd.f32 %v2776_v61, %v2728_v37 }
 0x2b2   : > { %v2084_v9 = vmax.f32 %v2068_v52, 0.0  ;;  %v1529_v20 = vpop.f32.mrf.mxu0 }
 0x2b3   : > { %v1530_v7 = vadd.f32 %v1529_v20, %v1336_v23 }
 0x2b4   : > { %2851 = vmatprep.mubr.msk.f32.mxu0 %vm591_vm2, %v2084_v9 }
 0x2b5   : > { %2852 = vmatmul.mubr.msk.f32.gmra.mxu0 %vm591_vm2, %v2085_v62 }
 0x2bb   : > { %v2824_v34 = vpop.f32.mrf.mxu1 }
 0x2bc   : > { %v2048_v33 = vadd.f32 %v2824_v34, %v1535_v41 }
 0x2bd   : > { %v1992_v30 = vpop.f32.mrf.mxu1 }
 0x2be   : > { %v2047_v27 = vadd.f32 %v1992_v30, %v1530_v7  ;;  %v2071_v26 = vadd.f32 %v4001_v45, %v2048_v33 }
 0x2c0   : > { %v2070_v1 = vadd.f32 %v4001_v45, %v2047_v27  ;;  %v2087_v31 = vmax.f32 %v2071_v26, 0.0  ;;  %v2779_v63 = vpop.f32.mrf.mxu0 }
 0x2c1   : > { %v1545_v29 = vadd.f32 %v2779_v63, %v3982_v32 }
 0x2c2   : > { %v2086_v51 = vmax.f32 %v2070_v1, 0.0  ;;  %v1539_v16 = vpop.f32.mrf.mxu0 }
 0x2c3   : > { %v1540_v28 = vadd.f32 %v1539_v16, %v3984_v14 }
 0x2c4   : > { %2854 = vmatprep.mubr.msk.f32.mxu0 %vm591_vm2, %v2086_v51 }
 0x2c5   : > { %2855 = vmatmul.mubr.msk.f32.gmra.mxu0 %vm591_vm2, %v2087_v31 }
 0x2cb   : > { %v2827_v22 = vpop.f32.mrf.mxu1 }
 0x2cc   : > { %v2050_v37 = vadd.f32 %v2827_v22, %v1545_v29 }
 0x2cd   : > { %v2002_v23 = vpop.f32.mrf.mxu1 }
 0x2ce   : > { %v2049_v48 = vadd.f32 %v2002_v23, %v1540_v28  ;;  %v2073_v19 = vadd.f32 %v4001_v45, %v2050_v37 }
 0x2d0   : > { %v2072_v5 = vadd.f32 %v4001_v45, %v2049_v48  ;;  %v2089_v21 = vmax.f32 %v2073_v19, 0.0  ;;  %v2782_v46 = vpop.f32.mrf.mxu0 }
 0x2d1   : > { %v1555_v32 = vadd.f32 %v2782_v46, %v3986_v42 }
 0x2d2   : > { %v2088_v0 = vmax.f32 %v2072_v5, 0.0  ;;  %v1549_v35 = vpop.f32.mrf.mxu0 }
 0x2d3   : > { %v1550_v14 = vadd.f32 %v1549_v35, %v3988_v50 }
 0x2d4   : > { %2857 = vmatprep.mubr.msk.f32.mxu0 %vm591_vm2, %v2088_v0 }
 0x2d5   : > { %2858 = vmatmul.mubr.msk.f32.gmra.mxu0 %vm591_vm2, %v2089_v21 }
 0x2db   : > { %v2830_v43 = vpop.f32.mrf.mxu1 }
 0x2dc   : > { %v2052_v54 = vadd.f32 %v2830_v43, %v1555_v32 }
 0x2dd   : > { %v2012_v40 = vpop.f32.mrf.mxu1 }
 0x2de   : > { %v2051_v4 = vadd.f32 %v2012_v40, %v1550_v14  ;;  %v2075_v3 = vadd.f32 %v4001_v45, %v2052_v54 }
 0x2e0   : > { %v2074_v55 = vadd.f32 %v4001_v45, %v2051_v4  ;;  %v2091_v2 = vmax.f32 %v2075_v3, 0.0  ;;  %v2785_v38 = vpop.f32.mrf.mxu0 }
 0x2e1   : > { %v1565_v42 = vadd.f32 %v2785_v38, %v3990_v24 }
 0x2e2   : > { %v2090_v57 = vmax.f32 %v2074_v55, 0.0  ;;  %v1559_v8 = vpop.f32.mrf.mxu0 }
 0x2e3   : > { %v1560_v50 = vadd.f32 %v1559_v8, %v3992_v47 }
 0x2e4   : > { %2860 = vmatprep.mubr.msk.f32.mxu0 %vm591_vm2, %v2090_v57 }
 0x2e5   : > { %2861 = vmatmul.mubr.msk.f32.gmra.mxu0 %vm591_vm2, %v2091_v2 }
 0x2eb   : > { %v2833_v58 = vpop.f32.mrf.mxu1 }
 0x2ec   : > { %v2054_v60 = vadd.f32 %v2833_v58, %v1565_v42 }
 0x2ed   : > { %v2022_v59 = vpop.f32.mrf.mxu1 }
 0x2ee   : > { %v2053_v18 = vadd.f32 %v2022_v59, %v1560_v50  ;;  %v2077_v13 = vadd.f32 %v4001_v45, %v2054_v60 }
 0x2f0   : > { %v2076_v11 = vadd.f32 %v4001_v45, %v2053_v18  ;;  %v2788_v53 = vpop.f32.mrf.mxu0  ;;  %v2093_v6 = vmax.f32 %v2077_v13, 0.0 }
 0x2f1   : > { %v1575_v24 = vadd.f32 %v2788_v53, %v3994_v39  ;;  %v2514_v39 = vld [vmem:[%s4083_s6] ss:$0 sm:$0xff] }
 0x2f2   : > { %v2092_v56 = vmax.f32 %v2076_v11, 0.0  ;;  %v1569_v12 = vpop.f32.mrf.mxu0 }
 0x2f3   : > { %v1570_v47 = vadd.f32 %v1569_v12, %v3996_v25 }
 0x2f4   : > { %2863 = vmatprep.mubr.msk.f32.mxu0 %vm591_vm2, %v2092_v56 }
 0x2f5   : > { %2864 = vmatmul.mubr.msk.f32.gmra.mxu0 %vm591_vm2, %v2093_v6 }
 0x2f8   : > { %v2836_v10 = vpop.f32.mrf.mxu1 }
 0x2f9   : > { %v2056_v15 = vadd.f32 %v2836_v10, %v1575_v24 }
 0x2fa   : > { %v2032_v17 = vpop.f32.mrf.mxu1 }
 0x2fb   : > { %v2055_v44 = vadd.f32 %v2032_v17, %v1570_v47  ;;  %v2079_v36 = vadd.f32 %v4001_v45, %v2056_v15 }
 0x2fd   : > { %v2078_v49 = vadd.f32 %v4001_v45, %v2055_v44  ;;  %v2095_v9 = vmax.f32 %v2079_v36, 0.0 }
 0x2ff   : > { %v2094_v52 = vmax.f32 %v2078_v49, 0.0 }
 0x301   : > { %2866 = vmatprep.mubr.msk.f32.mxu0 %vm591_vm2, %v2094_v52 }
 0x302   : > { %2867 = vmatmul.mubr.msk.f32.gmra.mxu0 %vm591_vm2, %v2095_v9 }
 0x355   : > { %v2847_v25 = vpop.f32.mrf.mxu0 }
 0x356   : > { %v2227_v62 = vadd.f32 %v2847_v25, %v2514_v39 }
 0x357   : > { %v2221_v61 = vpop.f32.mrf.mxu0 }
 0x358   : > { %2301 = vst [vmem:[%s3064_s9 + $0x8] sm:$0xff] %v2227_v62  ;;  %v2222_v20 = vadd.f32 %v2514_v39, %v2221_v61 }
 0x35a   : > { %2300 = vst [vmem:[%s3064_s9] sm:$0xff] %v2222_v20 }
 0x365   : > { %v2850_v45 = vpop.f32.mrf.mxu0 }
 0x366   : > { %v2237_v41 = vadd.f32 %v2850_v45, %v2514_v39 }
 0x367   : > { %v2231_v34 = vpop.f32.mrf.mxu0 }
 0x368   : > { %2303 = vst [vmem:[%s3064_s9 + $0x18] sm:$0xff] %v2237_v41  ;;  %v2232_v7 = vadd.f32 %v2514_v39, %v2231_v34 }
 0x36a   : > { %2302 = vst [vmem:[%s3064_s9 + $0x10] sm:$0xff] %v2232_v7 }
 0x375   : > { %v2853_v33 = vpop.f32.mrf.mxu0 }
 0x376   : > { %v2247_v30 = vadd.f32 %v2853_v33, %v2514_v39 }
 0x377   : > { %v2241_v27 = vpop.f32.mrf.mxu0 }
 0x378   : > { %2305 = vst [vmem:[%s3064_s9 + $0x28] sm:$0xff] %v2247_v30  ;;  %v2242_v26 = vadd.f32 %v2514_v39, %v2241_v27 }
 0x37a   : > { %2304 = vst [vmem:[%s3064_s9 + $0x20] sm:$0xff] %v2242_v26 }
 0x385   : > { %v2856_v1 = vpop.f32.mrf.mxu0 }
 0x386   : > { %v2257_v51 = vadd.f32 %v2856_v1, %v2514_v39 }
 0x387   : > { %v2251_v31 = vpop.f32.mrf.mxu0 }
 0x388   : > { %2307 = vst [vmem:[%s3064_s9 + $0x38] sm:$0xff] %v2257_v51  ;;  %v2252_v63 = vadd.f32 %v2514_v39, %v2251_v31 }
 0x38a   : > { %2306 = vst [vmem:[%s3064_s9 + $0x30] sm:$0xff] %v2252_v63 }
 0x395   : > { %v2859_v16 = vpop.f32.mrf.mxu0 }
 0x396   : > { %v2267_v29 = vadd.f32 %v2859_v16, %v2514_v39 }
 0x397   : > { %v2261_v22 = vpop.f32.mrf.mxu0 }
 0x398   : > { %2309 = vst [vmem:[%s3064_s9 + $0x48] sm:$0xff] %v2267_v29  ;;  %v2262_v28 = vadd.f32 %v2514_v39, %v2261_v22 }
 0x39a   : > { %2308 = vst [vmem:[%s3064_s9 + $0x40] sm:$0xff] %v2262_v28 }
 0x3a5   : > { %v2862_v37 = vpop.f32.mrf.mxu0 }
 0x3a6   : > { %v2277_v23 = vadd.f32 %v2862_v37, %v2514_v39 }
 0x3a7   : > { %v2271_v48 = vpop.f32.mrf.mxu0 }
 0x3a8   : > { %2311 = vst [vmem:[%s3064_s9 + $0x58] sm:$0xff] %v2277_v23  ;;  %v2272_v19 = vadd.f32 %v2514_v39, %v2271_v48 }
 0x3aa   : > { %2310 = vst [vmem:[%s3064_s9 + $0x50] sm:$0xff] %v2272_v19 }
 0x3b5   : > { %v2865_v5 = vpop.f32.mrf.mxu0 }
 0x3b6   : > { %v2287_v0 = vadd.f32 %v2865_v5, %v2514_v39 }
 0x3b7   : > { %v2281_v21 = vpop.f32.mrf.mxu0 }
 0x3b8   : > { %2313 = vst [vmem:[%s3064_s9 + $0x68] sm:$0xff] %v2287_v0  ;;  %v2282_v46 = vadd.f32 %v2514_v39, %v2281_v21 }
 0x3ba   : > { %2312 = vst [vmem:[%s3064_s9 + $0x60] sm:$0xff] %v2282_v46 }
 0x3c2   : > { %v2868_v35 = vpop.f32.mrf.mxu0 }
 0x3c3   : > { %v2297_v32 = vadd.f32 %v2868_v35, %v2514_v39 }
 0x3c4   : > { %v2291_v43 = vpop.f32.mrf.mxu0 }
 0x3c5   : > { %2315 = vst [vmem:[%s3064_s9 + $0x78] sm:$0xff] %v2297_v32  ;;  %v2292_v14 = vadd.f32 %v2514_v39, %v2291_v43 }
 0x3c7   : > { %2314 = vst [vmem:[%s3064_s9 + $0x70] sm:$0xff] %v2292_v14 }
 0x3c8 PF: > { %s17_s28 = sadd.s32 1, %s2968_s28   ;;  %s4123_s24 = smov %s2960_s26 }
 0x3c9   : > { %p14_p10 = scmp.ge.s32.totalorder %s17_s28, 6   ;;  %s4124_s25 = smov %s2964_s27 }
 0x3ca   : > { %s4125_s26 = smov %s4128_s29  ;;  %s4126_s27 = smov %s4132_s30 }
 0x3cb   :  { %16 = sbr.rel (!%p14_p10) target bundleno = 3 (0x3), region = 91 }

</bundles_post_ra>
